<compile_context>
chip_gen: v7x
topology: tpu7x:2x2x1
jax: 0.10.0
libtpu: 0.0.40
codegen_flags: <defaults>
</compile_context>

<pallas_src>
import functools

import jax
import jax.numpy as jnp
from jax.experimental import pallas as pl
from jax.experimental.pallas import tpu as pltpu


# ----------------------------------------------------------------------------
# Kernel
# ----------------------------------------------------------------------------
def _sage_layer_kernel(*refs, apply_relu, project_first):
    """One SAGEConv layer tile. Grid = (row tiles "parallel", N-reduction "arbitrary").

    project_first == True  (xk already projected: Z = X @ Wl, hoisted outside):
        refs = (a, z, xi, wr, b, inv_deg, o, acc)
    project_first == False (aggregate raw features, project in epilogue):
        refs = (a, x, xi, wl, wr, b, inv_deg, o, acc)

    a       : [TM, TK]    int8 edge counts (un-normalized adjacency tile)
    xk      : [TK, C]     bf16 neighbor-source rows (C = Fout if projected else Fin)
    xi      : [TM, Fin]   bf16 root rows for this row tile
    wl, wr  : [Fin, Fout] bf16 weights
    b       : [1, Fout]   f32 bias
    inv_deg : [TM, 1]     f32 exact 1/deg (0 for isolated / padded rows)
    o       : [TM, Fout]  output tile
    acc     : [TM, C]     f32 VMEM accumulator
    """
    if project_first:
        a_ref, xk_ref, xi_ref, wr_ref, b_ref, invdeg_ref, o_ref, acc_ref = refs
        wl_ref = None
    else:
        a_ref, xk_ref, xi_ref, wl_ref, wr_ref, b_ref, invdeg_ref, o_ref, acc_ref = refs

    k = pl.program_id(1)
    nk = pl.num_programs(1)

    @pl.when(k == 0)
    def _():
        acc_ref[...] = jnp.zeros_like(acc_ref)

    # A is stored as int8 edge counts; the cast to the bf16 MXU dtype is VPU work
    # that hides under the (dominant) A-tile DMA.
    a_blk = a_ref[...].astype(jnp.float32).astype(xk_ref.dtype)
    acc_ref[...] += jnp.dot(a_blk, xk_ref[...], preferred_element_type=jnp.float32)

    @pl.when(k == nk - 1)
    def _():
        # Exact mean: f32 1/deg applied once, after the full reduction.
        agg = acc_ref[...] * invdeg_ref[...]
        if project_first:
            out = agg
        else:
            out = jnp.dot(agg.astype(wl_ref.dtype), wl_ref[...],
                          preferred_element_type=jnp.float32)
        # Root branch + bias epilogue, kept in f32.
        # TODO(synk): on v6e/v7x fuse the two K=128 epilogue matmuls into one K=256
        # matmul ([agg | xi] @ [[Wl],[Wr]]) to fill the 256-wide MXU.
        out = out + jnp.dot(xi_ref[...], wr_ref[...],
                            preferred_element_type=jnp.float32)
        out = out + b_ref[...]
        if apply_relu:
            out = jnp.maximum(out, 0.0)
        o_ref[...] = out.astype(o_ref.dtype)


# ----------------------------------------------------------------------------
# Wrapper helpers
# ----------------------------------------------------------------------------
def _round_up(x, m):
    return ((x + m - 1) // m) * m


def _pick_tile(n, candidates):
    for c in candidates:
        if c <= n and n % c == 0:
            return c
    return n


def _vmem_limit_bytes():
    # Generation-aware scoped-VMEM cap: ~3/4 of physical (96 MiB on 128-MiB
    # v5e/v6e, 48 MiB on 64-MiB v7x). Falls back to a v7x-safe constant.
    try:
        cap = pltpu.get_tpu_info().vmem_capacity_bytes
        return int(min(cap * 3 // 4, 96 * 1024 * 1024))
    except Exception:
        return 48 * 1024 * 1024


def _layer_vmem_bytes(tm, tk, feat_cols, f_in, f_out, out_itemsize, project_first):
    """Rough per-step VMEM footprint (double-buffered pipeline buffers + scratch)."""
    total = 2 * tm * tk                          # A tile, int8
    total += 2 * tk * feat_cols * 2              # xk / Z tile, bf16
    total += 2 * tm * f_in * 2                   # xi tile, bf16
    if not project_first:
        total += 2 * f_in * f_out * 2            # Wl
    total += 2 * f_in * f_out * 2                # Wr
    total += 2 * 8 * f_out * 4                   # bias (sublane-padded)
    total += 2 * tm * 128 * 4                    # inv_deg [TM,1] (lane-padded)
    total += 2 * tm * f_out * out_itemsize       # output tile
    total += tm * feat_cols * 4                  # f32 accumulator scratch
    return total


# ----------------------------------------------------------------------------
# One SAGEConv layer
# ----------------------------------------------------------------------------
def sage_layer(a_int8, inv_deg, x, wl, wr, b, *, apply_relu, out_dtype):
    """a_int8: [Npad, Npad] int8 edge counts; inv_deg: [Npad, 1] f32;
    x: [Npad, Fin_pad] bf16; wl/wr: [Fin_pad, Fout_pad] bf16; b: [1, Fout_pad] f32.
    Returns [Npad, Fout_pad] in out_dtype."""
    n_pad = a_int8.shape[0]
    f_in = x.shape[1]
    f_out = wl.shape[1]
    project_first = f_out <= f_in

    if project_first:
        # Hoist the neighbor projection out of the grid loop: Z = X @ Wl computed
        # once (plain XLA matmul, f32 accumulate, stored bf16). The kernel's inner
        # loop then only does acc += A_tile @ Z_tile.
        xk = jnp.dot(x, wl, preferred_element_type=jnp.float32).astype(x.dtype)
        feat_cols = f_out
    else:
        xk = x
        feat_cols = f_in

    vmem_limit = _vmem_limit_bytes()
    budget = vmem_limit // 2
    out_isz = jnp.dtype(out_dtype).itemsize

    # Large tiles (A tile in the MiB range) to amortize per-grid-step overhead;
    # keep >= 2 row tiles when possible so the "parallel" axis can be split across
    # v7x's two TensorCores.
    max_tm = n_pad if n_pad < 256 else n_pad // 2
    tm = _pick_tile(n_pad, tuple(c for c in (1024, 512, 256, 128) if c <= max_tm))
    tk = _pick_tile(n_pad, (2048, 1024, 512, 256, 128))
    while tk > 128 and _layer_vmem_bytes(tm, tk, feat_cols, f_in, f_out, out_isz,
                                         project_first) > budget:
        tk //= 2
    while tm > 128 and _layer_vmem_bytes(tm, tk, feat_cols, f_in, f_out, out_isz,
                                         project_first) > budget:
        tm //= 2

    grid = (n_pad // tm, n_pad // tk)
    n_row_tiles = grid[0]

    # Inputs and in_specs are built together so the pytrees always match.
    inputs = [a_int8, xk, x]
    in_specs = [
        pl.BlockSpec((tm, tk), lambda i, k: (i, k)),         # A tile
        pl.BlockSpec((tk, feat_cols), lambda i, k: (k, 0)),  # xk / Z (source rows)
        pl.BlockSpec((tm, f_in), lambda i, k: (i, 0)),       # xi (root rows)
    ]
    if not project_first:
        inputs.append(wl)
        in_specs.append(pl.BlockSpec((f_in, f_out), lambda i, k: (0, 0)))  # Wl
    inputs += [wr, b, inv_deg]
    in_specs += [
        pl.BlockSpec((f_in, f_out), lambda i, k: (0, 0)),    # Wr
        pl.BlockSpec((1, f_out), lambda i, k: (0, 0)),       # bias
        pl.BlockSpec((tm, 1), lambda i, k: (i, 0)),          # 1/deg
    ]
    # TODO(synk): add an f_out grid axis (tile Wl/Wr over output columns) for very
    # wide feature dims so resident weight buffers stay inside v7x's 64 MiB VMEM.

    kernel = functools.partial(_sage_layer_kernel, apply_relu=apply_relu,
                               project_first=project_first)

    # Cost estimate (includes the n_row_tiles re-reads of the xk/Z stream).
    flops = 2 * n_pad * n_pad * feat_cols + 2 * n_pad * f_in * f_out
    if not project_first:
        flops += 2 * n_pad * f_in * f_out
    bytes_accessed = (
        a_int8.size
        + n_row_tiles * xk.size * xk.dtype.itemsize
        + x.size * x.dtype.itemsize
        + (0 if project_first else wl.size * wl.dtype.itemsize)
        + wr.size * wr.dtype.itemsize
        + b.size * b.dtype.itemsize
        + inv_deg.size * inv_deg.dtype.itemsize
        + n_pad * f_out * out_isz
    )

    return pl.pallas_call(
        kernel,
        out_shape=jax.ShapeDtypeStruct((n_pad, f_out), out_dtype),
        grid_spec=pltpu.PrefetchScalarGridSpec(
            num_scalar_prefetch=0,
            grid=grid,
            in_specs=in_specs,
            out_specs=pl.BlockSpec((tm, f_out), lambda i, k: (i, 0)),
            scratch_shapes=[pltpu.VMEM((tm, feat_cols), jnp.float32)],
        ),
        compiler_params=pltpu.CompilerParams(
            dimension_semantics=("parallel", "arbitrary"),
            vmem_limit_bytes=vmem_limit,
        ),
        cost_estimate=pl.CostEstimate(flops=int(flops), transcendentals=0,
                                      bytes_accessed=int(bytes_accessed)),
    )(*inputs)


# ----------------------------------------------------------------------------
# Full forward pass
# ----------------------------------------------------------------------------
def build_adjacency(edge_index, n_pad):
    """Dense un-normalized adjacency (edge-multiplicity counts) as int8, plus the
    exact f32 per-row 1/deg used in the kernel epilogue. Row i holds counts over
    source nodes j of edges j -> i; isolated / padding rows get inv_deg = 0,
    matching scatter_mean semantics."""
    src = edge_index[0]
    dst = edge_index[1]
    counts = jnp.zeros((n_pad, n_pad), jnp.float32).at[dst, src].add(1.0)
    deg = counts.sum(axis=1, keepdims=True)
    inv_deg = jnp.where(deg > 0, 1.0 / jnp.maximum(deg, 1.0), 0.0)
    # TODO(synk): for large sparse graphs replace the dense O(N^2) adjacency with a
    # scalar-prefetch gather formulation so cost scales with |E| instead of N^2.
    return counts.astype(jnp.int8), inv_deg


def sage_forward(x, edge_index, params):
    n, f_in = x.shape
    hidden = params["wl1"].shape[1]
    f_out = params["wl2"].shape[1]

    # Pad nodes / feature dims to multiples of 128 (lane-dense loads and stores).
    n_pad = _round_up(max(n, 128), 128)
    f_in_pad = _round_up(f_in, 128)
    hid_pad = _round_up(hidden, 128)
    f_out_pad = _round_up(f_out, 128)

    cdt = jnp.bfloat16  # MXU compute dtype; accumulation stays f32 in-kernel.

    a_int8, inv_deg = build_adjacency(edge_index, n_pad)

    x_p = jnp.zeros((n_pad, f_in_pad), cdt).at[:n, :f_in].set(x.astype(cdt))

    def pad_w(w, r, c):
        return jnp.zeros((r, c), cdt).at[:w.shape[0], :w.shape[1]].set(w.astype(cdt))

    def pad_b(bv, c):
        return jnp.zeros((1, c), jnp.float32).at[:, :bv.shape[1]].set(
            bv.astype(jnp.float32))

    wl1 = pad_w(params["wl1"], f_in_pad, hid_pad)
    wr1 = pad_w(params["wr1"], f_in_pad, hid_pad)
    b1 = pad_b(params["b1"], hid_pad)
    wl2 = pad_w(params["wl2"], hid_pad, f_out_pad)
    wr2 = pad_w(params["wr2"], hid_pad, f_out_pad)
    b2 = pad_b(params["b2"], f_out_pad)

    # h stays padded + bf16 between layers (no slice / re-pad round-trip).
    h = sage_layer(a_int8, inv_deg, x_p, wl1, wr1, b1,
                   apply_relu=True, out_dtype=cdt)
    out = sage_layer(a_int8, inv_deg, h, wl2, wr2, b2,
                     apply_relu=False, out_dtype=jnp.float32)
    return out[:n, :f_out]


# ----------------------------------------------------------------------------
# Pure-JAX reference (for correctness check) and params
# ----------------------------------------------------------------------------
def sage_reference(x, edge_index, params):
    n = x.shape[0]
    src, dst = edge_index[0], edge_index[1]

    def layer(feat, wl, wr, b):
        msg = jnp.zeros((n, feat.shape[1]), feat.dtype).at[dst].add(feat[src])
        cnt = jnp.zeros((n, 1), feat.dtype).at[dst].add(1.0)
        agg = jnp.where(cnt > 0, msg / jnp.maximum(cnt, 1.0), 0.0)
        return agg @ wl + feat @ wr + b

    h = jnp.maximum(layer(x, params["wl1"], params["wr1"], params["b1"]), 0.0)
    return layer(h, params["wl2"], params["wr2"], params["b2"])


def init_params(key, in_channels, hidden_channels, out_channels):
    ks = jax.random.split(key, 6)
    s1 = 1.0 / jnp.sqrt(in_channels)
    s2 = 1.0 / jnp.sqrt(hidden_channels)
    return {
        "wl1": jax.random.normal(ks[0], (in_channels, hidden_channels), jnp.float32) * s1,
        "wr1": jax.random.normal(ks[1], (in_channels, hidden_channels), jnp.float32) * s1,
        "b1": jax.random.normal(ks[2], (1, hidden_channels), jnp.float32) * 0.01,
        "wl2": jax.random.normal(ks[3], (hidden_channels, out_channels), jnp.float32) * s2,
        "wr2": jax.random.normal(ks[4], (hidden_channels, out_channels), jnp.float32) * s2,
        "b2": jax.random.normal(ks[5], (1, out_channels), jnp.float32) * 0.01,
    }


if __name__ == "__main__":
    key = jax.random.PRNGKey(0)
    k_x, k_e, k_p = jax.random.split(key, 3)

    num_nodes = 300          # pads to 384 -> grid (3, 3): exercises both grid axes
    in_channels = 16
    hidden_channels = 32
    out_channels = 8
    num_edges = 1200

    x = jax.random.normal(k_x, (num_nodes, in_channels), jnp.float32)
    edge_index = jax.random.randint(k_e, (2, num_edges), 0, num_nodes, jnp.int32)

    params = init_params(k_p, in_channels, hidden_channels, out_channels)

    out = jax.jit(sage_forward)(x, edge_index, params)
    out = jax.block_until_ready(out)

    assert out.shape == (num_nodes, out_channels)
    assert bool(jnp.all(jnp.isfinite(out)))

    ref = sage_reference(x, edge_index, params)
    max_err = float(jnp.max(jnp.abs(out - ref)))
    assert max_err < 0.25, f"max abs error vs reference too large: {max_err}"

    print("KERNEL_OK")
</pallas_src>

<mosaic_0001>
module attributes {stable_mosaic.version = 11 : i64} {
  func.func private @main(%arg0: i32) attributes {dimension_semantics = [#tpu.dimension_semantics<core_parallel>], iteration_bounds = array<i64: 2>, tpu.core_type = #tpu.core_type<sc_scalar_subcore>, window_params = []} {
    return
  }
}

module attributes {stable_mosaic.version = 11 : i64} {
  func.func private @main(%arg0: i32) attributes {dimension_semantics = [#tpu.dimension_semantics<core_parallel>], iteration_bounds = array<i64: 2>, tpu.core_type = #tpu.core_type<sc_scalar_subcore>, window_params = []} {
    return
  }
}

module attributes {stable_mosaic.version = 11 : i64} {
  func.func @_sage_layer_kernel(%arg0: i32, %arg1: i32, %arg2: memref<128x128xi8, #tpu.memory_space<vmem>>, %arg3: memref<128x128xbf16, #tpu.memory_space<vmem>>, %arg4: memref<128x128xbf16, #tpu.memory_space<vmem>>, %arg5: memref<128x128xbf16, #tpu.memory_space<vmem>>, %arg6: memref<1x128xf32, #tpu.memory_space<vmem>>, %arg7: memref<128x1xf32, #tpu.memory_space<vmem>>, %arg8: memref<128x128xbf16, #tpu.memory_space<vmem>>, %arg9: memref<128x128xf32, #tpu.memory_space<vmem>>) attributes {dimension_semantics = [#tpu.dimension_semantics<parallel>, #tpu.dimension_semantics<arbitrary>], iteration_bounds = array<i64: 3, 3>, scalar_prefetch = 0 : i64, scratch_operands = 1 : i64, tpu.core_type = #tpu.core_type<tc>, window_params = [{transform_indices = @transform_0, window_bounds = array<i64: 128, 128>}, {transform_indices = @transform_1, window_bounds = array<i64: 128, 128>}, {transform_indices = @transform_2, window_bounds = array<i64: 128, 128>}, {pipeline_mode = #tpu.pipeline_mode<synchronous>, transform_indices = @transform_3, window_bounds = array<i64: 128, 128>}, {pipeline_mode = #tpu.pipeline_mode<synchronous>, transform_indices = @transform_4, window_bounds = array<i64: 1, 128>}, {transform_indices = @transform_5, window_bounds = array<i64: 128, 1>}, {transform_indices = @transform_6, window_bounds = array<i64: 128, 128>}]} {
    %c0_i32 = arith.constant 0 : i32
    %0 = arith.cmpi eq, %arg1, %c0_i32 : i32
    %1 = arith.extui %0 : i1 to i32
    %c0_i32_0 = arith.constant 0 : i32
    %2 = arith.cmpi ne, %1, %c0_i32_0 : i32
    scf.if %2 {
      %cst_9 = arith.constant 0.000000e+00 : f32
      %14 = vector.broadcast %cst_9 : f32 to vector<128x128xf32>
      %c0_10 = arith.constant 0 : index
      %c0_11 = arith.constant 0 : index
      %15 = vector.load %arg9[%c0_10, %c0_11] : memref<128x128xf32, #tpu.memory_space<vmem>>, vector<128x128xf32>
      tpu.vector_store %arg9[%c0_10, %c0_11], %14 {strides = array<i32>} : memref<128x128xf32, #tpu.memory_space<vmem>>, vector<128x128xf32>,
    } else {
    }
    %c0 = arith.constant 0 : index
    %c0_1 = arith.constant 0 : index
    %3 = vector.load %arg2[%c0, %c0_1] : memref<128x128xi8, #tpu.memory_space<vmem>>, vector<128x128xi8>
    %4 = arith.sitofp %3 : vector<128x128xi8> to vector<128x128xf32>
    %5 = arith.truncf %4 : vector<128x128xf32> to vector<128x128xbf16>
    %c0_2 = arith.constant 0 : index
    %c0_3 = arith.constant 0 : index
    %6 = vector.load %arg9[%c0_2, %c0_3] : memref<128x128xf32, #tpu.memory_space<vmem>>, vector<128x128xf32>
    %c0_4 = arith.constant 0 : index
    %c0_5 = arith.constant 0 : index
    %7 = vector.load %arg3[%c0_4, %c0_5] : memref<128x128xbf16, #tpu.memory_space<vmem>>, vector<128x128xbf16>
    %cst = arith.constant dense<0.000000e+00> : vector<128x128xf32>
    %8 = tpu.matmul %5, %7, %cst {dimension_numbers = #tpu.dot_dimension_numbers<[1], [0], [0], [1], [0, 0, 1, 1], [], []>} : vector<128x128xbf16>, vector<128x128xbf16>, vector<128x128xf32> -> vector<128x128xf32>
    %9 = arith.addf %6, %8 : vector<128x128xf32>
    %c0_6 = arith.constant 0 : index
    %c0_7 = arith.constant 0 : index
    %10 = vector.load %arg9[%c0_6, %c0_7] : memref<128x128xf32, #tpu.memory_space<vmem>>, vector<128x128xf32>
    tpu.vector_store %arg9[%c0_6, %c0_7], %9 {strides = array<i32>} : memref<128x128xf32, #tpu.memory_space<vmem>>, vector<128x128xf32>,
    %c2_i32 = arith.constant 2 : i32
    %11 = arith.cmpi eq, %arg1, %c2_i32 : i32
    %12 = arith.extui %11 : i1 to i32
    %c0_i32_8 = arith.constant 0 : i32
    %13 = arith.cmpi ne, %12, %c0_i32_8 : i32
    scf.if %13 {
      %c0_9 = arith.constant 0 : index
      %c0_10 = arith.constant 0 : index
      %14 = vector.load %arg9[%c0_9, %c0_10] : memref<128x128xf32, #tpu.memory_space<vmem>>, vector<128x128xf32>
      %c0_11 = arith.constant 0 : index
      %c0_12 = arith.constant 0 : index
      %15 = vector.load %arg7[%c0_11, %c0_12] : memref<128x1xf32, #tpu.memory_space<vmem>>, vector<128x1xf32>
      %16 = vector.broadcast %15 : vector<128x1xf32> to vector<128x128xf32>
      %17 = arith.mulf %14, %16 : vector<128x128xf32>
      %c0_13 = arith.constant 0 : index
      %c0_14 = arith.constant 0 : index
      %18 = vector.load %arg4[%c0_13, %c0_14] : memref<128x128xbf16, #tpu.memory_space<vmem>>, vector<128x128xbf16>
      %c0_15 = arith.constant 0 : index
      %c0_16 = arith.constant 0 : index
      %19 = vector.load %arg5[%c0_15, %c0_16] : memref<128x128xbf16, #tpu.memory_space<vmem>>, vector<128x128xbf16>
      %cst_17 = arith.constant dense<0.000000e+00> : vector<128x128xf32>
      %20 = tpu.matmul %18, %19, %cst_17 {dimension_numbers = #tpu.dot_dimension_numbers<[1], [0], [0], [1], [0, 0, 1, 1], [], []>} : vector<128x128xbf16>, vector<128x128xbf16>, vector<128x128xf32> -> vector<128x128xf32>
      %21 = arith.addf %17, %20 : vector<128x128xf32>
      %c0_18 = arith.constant 0 : index
      %c0_19 = arith.constant 0 : index
      %22 = vector.load %arg6[%c0_18, %c0_19] : memref<1x128xf32, #tpu.memory_space<vmem>>, vector<1x128xf32>
      %23 = vector.broadcast %22 : vector<1x128xf32> to vector<128x128xf32>
      %24 = arith.addf %21, %23 : vector<128x128xf32>
      %cst_20 = arith.constant 0.000000e+00 : f32
      %25 = vector.broadcast %cst_20 : f32 to vector<128x128xf32>
      %26 = arith.maximumf %24, %25 : vector<128x128xf32>
      %27 = arith.truncf %26 : vector<128x128xf32> to vector<128x128xbf16>
      %c0_21 = arith.constant 0 : index
      %c0_22 = arith.constant 0 : index
      %28 = vector.load %arg8[%c0_21, %c0_22] : memref<128x128xbf16, #tpu.memory_space<vmem>>, vector<128x128xbf16>
      tpu.vector_store %arg8[%c0_21, %c0_22], %27 {strides = array<i32>} : memref<128x128xbf16, #tpu.memory_space<vmem>>, vector<128x128xbf16>,
    } else {
    }
    return
  }
  func.func @transform_0(%arg0: i32, %arg1: i32) -> (i32, i32) {
    %c0_i32 = arith.constant 0 : i32
    return %arg0, %arg1 : i32, i32
  }
  func.func @transform_1(%arg0: i32, %arg1: i32) -> (i32, i32) {
    %c0_i32 = arith.constant 0 : i32
    %c0_i32_0 = arith.constant 0 : i32
    return %arg1, %c0_i32 : i32, i32
  }
  func.func @transform_2(%arg0: i32, %arg1: i32) -> (i32, i32) {
    %c0_i32 = arith.constant 0 : i32
    %c0_i32_0 = arith.constant 0 : i32
    return %arg0, %c0_i32 : i32, i32
  }
  func.func @transform_3(%arg0: i32, %arg1: i32) -> (i32, i32) {
    %c0_i32 = arith.constant 0 : i32
    %c0_i32_0 = arith.constant 0 : i32
    %c0_i32_1 = arith.constant 0 : i32
    return %c0_i32, %c0_i32_0 : i32, i32
  }
  func.func @transform_4(%arg0: i32, %arg1: i32) -> (i32, i32) {
    %c0_i32 = arith.constant 0 : i32
    %c0_i32_0 = arith.constant 0 : i32
    %c0_i32_1 = arith.constant 0 : i32
    return %c0_i32, %c0_i32_0 : i32, i32
  }
  func.func @transform_5(%arg0: i32, %arg1: i32) -> (i32, i32) {
    %c0_i32 = arith.constant 0 : i32
    %c0_i32_0 = arith.constant 0 : i32
    return %arg0, %c0_i32 : i32, i32
  }
  func.func @transform_6(%arg0: i32, %arg1: i32) -> (i32, i32) {
    %c0_i32 = arith.constant 0 : i32
    %c0_i32_0 = arith.constant 0 : i32
    return %arg0, %c0_i32 : i32, i32
  }
}

module attributes {stable_mosaic.version = 11 : i64} {
  func.func @_sage_layer_kernel(%arg0: i32, %arg1: i32, %arg2: memref<128x128xi8, #tpu.memory_space<vmem>>, %arg3: memref<128x128xbf16, #tpu.memory_space<vmem>>, %arg4: memref<128x128xbf16, #tpu.memory_space<vmem>>, %arg5: memref<128x128xbf16, #tpu.memory_space<vmem>>, %arg6: memref<1x128xf32, #tpu.memory_space<vmem>>, %arg7: memref<128x1xf32, #tpu.memory_space<vmem>>, %arg8: memref<128x128xf32, #tpu.memory_space<vmem>>, %arg9: memref<128x128xf32, #tpu.memory_space<vmem>>) attributes {dimension_semantics = [#tpu.dimension_semantics<parallel>, #tpu.dimension_semantics<arbitrary>], iteration_bounds = array<i64: 3, 3>, scalar_prefetch = 0 : i64, scratch_operands = 1 : i64, tpu.core_type = #tpu.core_type<tc>, window_params = [{transform_indices = @transform_0, window_bounds = array<i64: 128, 128>}, {transform_indices = @transform_1, window_bounds = array<i64: 128, 128>}, {transform_indices = @transform_2, window_bounds = array<i64: 128, 128>}, {pipeline_mode = #tpu.pipeline_mode<synchronous>, transform_indices = @transform_3, window_bounds = array<i64: 128, 128>}, {pipeline_mode = #tpu.pipeline_mode<synchronous>, transform_indices = @transform_4, window_bounds = array<i64: 1, 128>}, {transform_indices = @transform_5, window_bounds = array<i64: 128, 1>}, {transform_indices = @transform_6, window_bounds = array<i64: 128, 128>}]} {
    %c0_i32 = arith.constant 0 : i32
    %0 = arith.cmpi eq, %arg1, %c0_i32 : i32
    %1 = arith.extui %0 : i1 to i32
    %c0_i32_0 = arith.constant 0 : i32
    %2 = arith.cmpi ne, %1, %c0_i32_0 : i32
    scf.if %2 {
      %cst_9 = arith.constant 0.000000e+00 : f32
      %14 = vector.broadcast %cst_9 : f32 to vector<128x128xf32>
      %c0_10 = arith.constant 0 : index
      %c0_11 = arith.constant 0 : index
      %15 = vector.load %arg9[%c0_10, %c0_11] : memref<128x128xf32, #tpu.memory_space<vmem>>, vector<128x128xf32>
      tpu.vector_store %arg9[%c0_10, %c0_11], %14 {strides = array<i32>} : memref<128x128xf32, #tpu.memory_space<vmem>>, vector<128x128xf32>,
    } else {
    }
    %c0 = arith.constant 0 : index
    %c0_1 = arith.constant 0 : index
    %3 = vector.load %arg2[%c0, %c0_1] : memref<128x128xi8, #tpu.memory_space<vmem>>, vector<128x128xi8>
    %4 = arith.sitofp %3 : vector<128x128xi8> to vector<128x128xf32>
    %5 = arith.truncf %4 : vector<128x128xf32> to vector<128x128xbf16>
    %c0_2 = arith.constant 0 : index
    %c0_3 = arith.constant 0 : index
    %6 = vector.load %arg9[%c0_2, %c0_3] : memref<128x128xf32, #tpu.memory_space<vmem>>, vector<128x128xf32>
    %c0_4 = arith.constant 0 : index
    %c0_5 = arith.constant 0 : index
    %7 = vector.load %arg3[%c0_4, %c0_5] : memref<128x128xbf16, #tpu.memory_space<vmem>>, vector<128x128xbf16>
    %cst = arith.constant dense<0.000000e+00> : vector<128x128xf32>
    %8 = tpu.matmul %5, %7, %cst {dimension_numbers = #tpu.dot_dimension_numbers<[1], [0], [0], [1], [0, 0, 1, 1], [], []>} : vector<128x128xbf16>, vector<128x128xbf16>, vector<128x128xf32> -> vector<128x128xf32>
    %9 = arith.addf %6, %8 : vector<128x128xf32>
    %c0_6 = arith.constant 0 : index
    %c0_7 = arith.constant 0 : index
    %10 = vector.load %arg9[%c0_6, %c0_7] : memref<128x128xf32, #tpu.memory_space<vmem>>, vector<128x128xf32>
    tpu.vector_store %arg9[%c0_6, %c0_7], %9 {strides = array<i32>} : memref<128x128xf32, #tpu.memory_space<vmem>>, vector<128x128xf32>,
    %c2_i32 = arith.constant 2 : i32
    %11 = arith.cmpi eq, %arg1, %c2_i32 : i32
    %12 = arith.extui %11 : i1 to i32
    %c0_i32_8 = arith.constant 0 : i32
    %13 = arith.cmpi ne, %12, %c0_i32_8 : i32
    scf.if %13 {
      %c0_9 = arith.constant 0 : index
      %c0_10 = arith.constant 0 : index
      %14 = vector.load %arg9[%c0_9, %c0_10] : memref<128x128xf32, #tpu.memory_space<vmem>>, vector<128x128xf32>
      %c0_11 = arith.constant 0 : index
      %c0_12 = arith.constant 0 : index
      %15 = vector.load %arg7[%c0_11, %c0_12] : memref<128x1xf32, #tpu.memory_space<vmem>>, vector<128x1xf32>
      %16 = vector.broadcast %15 : vector<128x1xf32> to vector<128x128xf32>
      %17 = arith.mulf %14, %16 : vector<128x128xf32>
      %c0_13 = arith.constant 0 : index
      %c0_14 = arith.constant 0 : index
      %18 = vector.load %arg4[%c0_13, %c0_14] : memref<128x128xbf16, #tpu.memory_space<vmem>>, vector<128x128xbf16>
      %c0_15 = arith.constant 0 : index
      %c0_16 = arith.constant 0 : index
      %19 = vector.load %arg5[%c0_15, %c0_16] : memref<128x128xbf16, #tpu.memory_space<vmem>>, vector<128x128xbf16>
      %cst_17 = arith.constant dense<0.000000e+00> : vector<128x128xf32>
      %20 = tpu.matmul %18, %19, %cst_17 {dimension_numbers = #tpu.dot_dimension_numbers<[1], [0], [0], [1], [0, 0, 1, 1], [], []>} : vector<128x128xbf16>, vector<128x128xbf16>, vector<128x128xf32> -> vector<128x128xf32>
      %21 = arith.addf %17, %20 : vector<128x128xf32>
      %c0_18 = arith.constant 0 : index
      %c0_19 = arith.constant 0 : index
      %22 = vector.load %arg6[%c0_18, %c0_19] : memref<1x128xf32, #tpu.memory_space<vmem>>, vector<1x128xf32>
      %23 = vector.broadcast %22 : vector<1x128xf32> to vector<128x128xf32>
      %24 = arith.addf %21, %23 : vector<128x128xf32>
      %c0_20 = arith.constant 0 : index
      %c0_21 = arith.constant 0 : index
      %25 = vector.load %arg8[%c0_20, %c0_21] : memref<128x128xf32, #tpu.memory_space<vmem>>, vector<128x128xf32>
      tpu.vector_store %arg8[%c0_20, %c0_21], %24 {strides = array<i32>} : memref<128x128xf32, #tpu.memory_space<vmem>>, vector<128x128xf32>,
    } else {
    }
    return
  }
  func.func @transform_0(%arg0: i32, %arg1: i32) -> (i32, i32) {
    %c0_i32 = arith.constant 0 : i32
    return %arg0, %arg1 : i32, i32
  }
  func.func @transform_1(%arg0: i32, %arg1: i32) -> (i32, i32) {
    %c0_i32 = arith.constant 0 : i32
    %c0_i32_0 = arith.constant 0 : i32
    return %arg1, %c0_i32 : i32, i32
  }
  func.func @transform_2(%arg0: i32, %arg1: i32) -> (i32, i32) {
    %c0_i32 = arith.constant 0 : i32
    %c0_i32_0 = arith.constant 0 : i32
    return %arg0, %c0_i32 : i32, i32
  }
  func.func @transform_3(%arg0: i32, %arg1: i32) -> (i32, i32) {
    %c0_i32 = arith.constant 0 : i32
    %c0_i32_0 = arith.constant 0 : i32
    %c0_i32_1 = arith.constant 0 : i32
    return %c0_i32, %c0_i32_0 : i32, i32
  }
  func.func @transform_4(%arg0: i32, %arg1: i32) -> (i32, i32) {
    %c0_i32 = arith.constant 0 : i32
    %c0_i32_0 = arith.constant 0 : i32
    %c0_i32_1 = arith.constant 0 : i32
    return %c0_i32, %c0_i32_0 : i32, i32
  }
  func.func @transform_5(%arg0: i32, %arg1: i32) -> (i32, i32) {
    %c0_i32 = arith.constant 0 : i32
    %c0_i32_0 = arith.constant 0 : i32
    return %arg0, %c0_i32 : i32, i32
  }
  func.func @transform_6(%arg0: i32, %arg1: i32) -> (i32, i32) {
    %c0_i32 = arith.constant 0 : i32
    %c0_i32_0 = arith.constant 0 : i32
    return %arg0, %c0_i32 : i32, i32
  }
}

</mosaic_0001>

<bundles_post_ra>
// kernel: sage_forward.3
= control target key start
LH: loop header
LB: loop body
LE: loop exit
PB: predicated region body
PF: predicated region fallthrough
CT: control target
= control target key end

     0   :  { %s1721_s0 = inlined_call_operand.vmem [shape: s8[384,384], index: 0, kind: input, shape index: {}]   ;;  %s1722_s1 = inlined_call_operand.vmem [shape: bf16[384,128], index: 1, kind: input, shape index: {}]   ;;  %s1723_s2 = inlined_call_operand.vmem [shape: bf16[384,128], index: 2, kind: input, shape index: {}]   ;;  %s1724_s3 = inlined_call_operand.vmem [shape: bf16[128,128], index: 3, kind: input, shape index: {}]   ;;  %s1725_s4 = inlined_call_operand.vmem [shape: f32[1,128], index: 4, kind: input, shape index: {}]   ;;  %s1726_s5 = inlined_call_operand.vmem [shape: f32[384,1], index: 5, kind: input, shape index: {}]   ;;  %s1727_s6 = inlined_call_operand.vmem [shape: f32[384,128], index: 6, kind: output, shape index: {}]  }
   0x1   :  { %1728 = sst [smem:[#allocation4_spill]] %s1721_s0 }
   0x2   :  { %s1502_s21 = smov 0   ;;  %s1504_s22 = smov 0  }
   0x3   :  { %s1506_s23 = smov 0   ;;  %s1508_s24 = smov 0  }
   0x4   :  { %s1510_s25 = smov 0   ;;  %s1512_s26 = smov 0  }
   0x5   :  { %s1514_s27 = smov 0  }
   0x6 LB: > { %s25_s28 = sadd.s32 1, %s1455_s25  ;;  %s28_s29 = sadd.s32 1, %s1459_s26  ;;  %s1463_s27 = sphi %s1514_s27, %s16_s27   ;;  %s1459_s26 = sphi %s1512_s26, %s1735_s26   ;;  %s1455_s25 = sphi %s1510_s25, %s1734_s25   ;;  %s1451_s24 = sphi %s1508_s24, %s1733_s24   ;;  %s1447_s23 = sphi %s1506_s23, %s1732_s23   ;;  %s1443_s22 = sphi %s1504_s22, %s1731_s22   ;;  %s1439_s21 = sphi %s1502_s21, %s1730_s21  }
   0x7   : > { %p26_p0 = scmp.ge.s32.totalorder %s25_s28, 3  ;;  %p44_p1 = scmp.ne.s32.totalorder %s1443_s22, %s1439_s21 }
   0x8   : > { %p45_p2 = scmp.eq.s32.totalorder %s1463_s27, 0  ;;  %s37_s9 = sadd.s32 1, %s1443_s22 }
   0x9   : > { %s1737_s28 = smov (%p26_p0, %s25_s28), 0  ;;  %s1739_s29 = smov (!%p26_p0, %s28_s29), %s1459_s26 }
   0xa   : > { %p46_p3 = por %p45_p2, %p44_p1  ;;  %p30_p4 = scmp.ge.s32.totalorder %s1739_s29, 3 }
   0xb   : > { %s33_s30 = ssub.s32 %s1455_s25, %s1737_s28  ;;  %p1152_p6 = scmp.ge.s32.totalorder %s1463_s27, 9 }
   0xc   : > { %s1741_s29 = smov (%p30_p4, %s1739_s29), 0 }
   0xd   : > { %s32_s7 = ssub.s32 %s1459_s26, %s1741_s29  ;;  %222 = sbr.rel (%p1152_p6) target bundleno = 32 (0x20), region = 24 }
   0xe   : > { %s34_s8 = sor.u32 %s33_s30, %s32_s7 }
   0xf   : > { %p35_p5 = scmp.eq.s32.totalorder %s34_s8, 0 }
  0x11   : > { %s1553_s10 = scalar_select %p35_p5, %s1443_s22, %s37_s9  }
  0x14   : > { %225 = sbr.rel (!%p46_p3) target bundleno = 32 (0x20), region = 28  ;;  %s227_s11 = sand.u32 (%p46_p3), 1, %s1443_s22  }
  0x15   : > { %s1324_s12 = smul.u32 (%p46_p3), 12, %s1459_s26  ;;  %s1153_s13 = sshll.u32 (%p46_p3), %s227_s11, 5 }
  0x16   : > { %s1729_s0 = sld [smem:[#allocation4_spill]] (%p46_p3)  ;;  %s229_s19 = scalar_lea.vmem (%p46_p3), [#allocation3], %s1153_s13 }
  0x17   : > { %s232_s14 = sadd.s32 (%p46_p3), %s1455_s25, %s1324_s12 }
  0x18   : > { %s1156_s15 = sshll.u32 (%p46_p3), %s232_s14, 3 }
  0x1c   : > { %s234_s18 = scalar_lea.vmem %s1729_s0, %s1156_s15 }
  0x1d   : > { %v268_v0 = vld [vmem:[%s234_s18] sm:$0xff]  ;;  %v270_v1 = vld [vmem:[%s234_s18 + $0x18] sm:$0xff]  ;;  %v272_v2 = vld [vmem:[%s234_s18 + $0x30] sm:$0xff] }
  0x1e   : > { %269 = vst [vmem:[%s229_s19] sm:$0xff] %v268_v0  ;;  %271 = vst [vmem:[%s229_s19 + $0x8] sm:$0xff] %v270_v1  ;;  %v274_v3 = vld [vmem:[%s234_s18 + $0x48] sm:$0xff] }
  0x1f   : > { %273 = vst [vmem:[%s229_s19 + $0x10] sm:$0xff] %v272_v2  ;;  %275 = vst [vmem:[%s229_s19 + $0x18] sm:$0xff] %v274_v3 }
  0x20 PF: > { %p1157_p7 = scmp.ge.s32.totalorder %s1463_s27, 1  ;;  %p307_p8 = scmp.lt.s32.totalorder %s1463_s27, 10 }
  0x22   : > { %p308_p9 = pnand %p1157_p7, %p307_p8 }
  0x23   : > { %s314_s20 = sand.u32 (!%p308_p9), 1, %s1439_s21   ;;  %s1159_s30 = sshll.u32 (!%p308_p9), %s1447_s23, 4 }
  0x24   : > { %311 = sbr.rel (%p308_p9) target bundleno = 535 (0x217), region = 78  ;;  %s1158_s7 = sshll.u32 (!%p308_p9), %s314_s20, 5 }
  0x25   : > { %p360_p10 = scmp.lt.s32.totalorder (!%p308_p9), %s1159_s30, 47  ;;  %s1161_s8 = sshll.u32 (!%p308_p9), %s1451_s24, 4 }
  0x26   : > { %p366_p11 = scmp.lt.s32.totalorder (!%p308_p9), %s1161_s8, 47  ;;  %p1167_p12 = scmp.ne.s32.totalorder (!%p308_p9), %s1447_s23, 0 }
  0x2b   : > { %s1743_s30 = smov (!%p360_p10, %s1159_s30), 47  ;;  %s1745_s8 = smov (!%p366_p11, %s1161_s8), 47 }
  0x2c   : > { %s1160_s9 = sshll.u32 %s1743_s30, 2  ;;  %s1162_s14 = sshll.u32 %s1745_s8, 2  ;;  %v1465_v4 = vmov (!%p1167_p12), 0.0  }
  0x2d   : > { %s1570_s13 = scalar_lea.vmem %s1722_s1, %s1160_s9  ;;  %s1164_s15 = sshll.u32 %s1745_s8, 3  ;;  %388 = vst [vmem:[#allocation2] sm:$0xff] (!%p1167_p12), %v1465_v4  ;;  %389 = vst [vmem:[#allocation2 + $0x8] sm:$0xff] (!%p1167_p12), %v1465_v4 }
  0x2e   : > { %s1575_s18 = scalar_lea.vmem %s1723_s2, %s1162_s14  ;;  %s1580_s24 = scalar_lea.vmem %s1726_s5, %s1164_s15  ;;  %390 = vst [vmem:[#allocation2 + $0x10] sm:$0xff] (!%p1167_p12), %v1465_v4  ;;  %391 = vst [vmem:[#allocation2 + $0x18] sm:$0xff] (!%p1167_p12), %v1465_v4 }
  0x2f   : > { %s1585_s0 = scalar_lea.vmem %s1727_s6, %s1164_s15  ;;  %s1587_s9 = scalar_lea.vmem [#allocation3], %s1158_s7  ;;  %392 = vst [vmem:[#allocation2 + $0x20] sm:$0xff] (!%p1167_p12), %v1465_v4  ;;  %393 = vst [vmem:[#allocation2 + $0x28] sm:$0xff] (!%p1167_p12), %v1465_v4 }
  0x30   : > { %387 = sbr.rel (%p1167_p12) target bundleno = 55 (0x37), region = 86  ;;  %394 = vst [vmem:[#allocation2 + $0x30] sm:$0xff] (!%p1167_p12), %v1465_v4  ;;  %395 = vst [vmem:[#allocation2 + $0x38] sm:$0xff] (!%p1167_p12), %v1465_v4 }
  0x31   : > { %396 = vst [vmem:[#allocation2 + $0x40] sm:$0xff] (!%p1167_p12), %v1465_v4  ;;  %397 = vst [vmem:[#allocation2 + $0x48] sm:$0xff] (!%p1167_p12), %v1465_v4 }
  0x32   : > { %398 = vst [vmem:[#allocation2 + $0x50] sm:$0xff] (!%p1167_p12), %v1465_v4  ;;  %399 = vst [vmem:[#allocation2 + $0x58] sm:$0xff] (!%p1167_p12), %v1465_v4 }
  0x33   : > { %400 = vst [vmem:[#allocation2 + $0x60] sm:$0xff] (!%p1167_p12), %v1465_v4  ;;  %401 = vst [vmem:[#allocation2 + $0x68] sm:$0xff] (!%p1167_p12), %v1465_v4 }
  0x34   : > { %402 = vst [vmem:[#allocation2 + $0x70] sm:$0xff] (!%p1167_p12), %v1465_v4  ;;  %403 = vst [vmem:[#allocation2 + $0x78] sm:$0xff] (!%p1167_p12), %v1465_v4 }
  0x37 PF: > { %v1383_v5 = vld [vmem:[%s1570_s13] sm:$0xff]   ;;  %v1384_v6 = vld [vmem:[%s1570_s13 + $0x8] sm:$0xff]   ;;  %v1385_v7 = vld [vmem:[%s1570_s13 + $0x10] sm:$0xff]   ;;  %p1176_p13 = scmp.ne.s32.totalorder %s1447_s23, 2 }
  0x38   : > { %1228 = vmatprep.subr.bf16.mxu0 %v1383_v5  ;;  %1292 = vmatprep.subr.bf16.mxu1 %v1383_v5  ;;  %v1386_v8 = vld [vmem:[%s1570_s13 + $0x18] sm:$0xff]   ;;  %v404_v9 = vld [vmem:[%s1587_s9] sm:$0xff]  ;;  %v406_v10 = vld [vmem:[%s1587_s9 + $0x10] sm:$0xff] }
  0x39   : > { %1229 = vmatpush3.bf16.msra.mxu0 %v1383_v5  ;;  %1300 = vmatpush3.bf16.msra.mxu1 %v1383_v5  ;;  %v408_v11 = vunpack.c.l.s8.bf16 %v404_v9  ;;  %v412_v12 = vunpack.c.l.s8.bf16 %v406_v10  ;;  %v1387_v13 = vld [vmem:[%s1570_s13 + $0x20] sm:$0xff]   ;;  %v1388_v14 = vld [vmem:[%s1570_s13 + $0x28] sm:$0xff]   ;;  %v1389_v15 = vld [vmem:[%s1570_s13 + $0x30] sm:$0xff]   ;;  %v409_v19 = vunpack.c.h.s8.bf16 %v404_v9  ;;  %v413_v20 = vunpack.c.h.s8.bf16 %v406_v10 }
  0x3a   : > { %1230 = vmatprep.subr.bf16.mxu0 %v1384_v6  ;;  %1293 = vmatprep.subr.bf16.mxu1 %v1384_v6  ;;  %v1390_v16 = vld [vmem:[%s1570_s13 + $0x38] sm:$0xff]   ;;  %v405_v17 = vld [vmem:[%s1587_s9 + $0x8] sm:$0xff]  ;;  %v418_v25 = vld [vmem:[#allocation2 + $0x10] sm:$0xff] }
  0x3b   : > { %1244 = vmatprep.mubr.bf16.mxu0 %v408_v11  ;;  %1252 = vmatprep.mubr.bf16.mxu1 %v412_v12  ;;  %v407_v18 = vld [vmem:[%s1587_s9 + $0x18] sm:$0xff]  ;;  %v410_v21 = vunpack.c.l.s8.bf16 %v405_v17  ;;  %v411_v23 = vunpack.c.h.s8.bf16 %v405_v17  ;;  %v426_v26 = vld [vmem:[#allocation2 + $0x50] sm:$0xff]  ;;  %v416_v27 = vld [vmem:[#allocation2] sm:$0xff]  ;;  %v1466_v11 = vmov (!%p1176_p13), 0  }
  0x3c   : > { %v414_v22 = vunpack.c.l.s8.bf16 %v407_v18  ;;  %v415_v24 = vunpack.c.h.s8.bf16 %v407_v18  ;;  %v424_v28 = vld [vmem:[#allocation2 + $0x40] sm:$0xff]  ;;  %v419_v31 = vld [vmem:[#allocation2 + $0x18] sm:$0xff]  ;;  %v417_v37 = vld [vmem:[#allocation2 + $0x8] sm:$0xff]  ;;  %1392 = vset.pattern.permute.xlu1 (!%p1176_p13), %v1466_v11  ;;  %1391 = vset.pattern.permute.xlu0 (!%p1176_p13), %v1466_v11 }
  0x3d   : > { %1231 = vmatpush3.bf16.msra.mxu0 %v1384_v6  ;;  %1301 = vmatpush3.bf16.msra.mxu1 %v1384_v6  ;;  %v427_v32 = vld [vmem:[#allocation2 + $0x58] sm:$0xff]  ;;  %v425_v38 = vld [vmem:[#allocation2 + $0x48] sm:$0xff]  ;;  %v422_v49 = vld [vmem:[#allocation2 + $0x30] sm:$0xff] }
  0x3e   : > { %1232 = vmatprep.subr.bf16.mxu0 %v1385_v7  ;;  %1294 = vmatprep.subr.bf16.mxu1 %v1385_v7  ;;  %v430_v50 = vld [vmem:[#allocation2 + $0x70] sm:$0xff]  ;;  %v420_v51 = vld [vmem:[#allocation2 + $0x20] sm:$0xff]  ;;  %v423_v55 = vld [vmem:[#allocation2 + $0x38] sm:$0xff] }
  0x3f   : > { %v428_v52 = vld [vmem:[#allocation2 + $0x60] sm:$0xff]  ;;  %v431_v56 = vld [vmem:[#allocation2 + $0x78] sm:$0xff]  ;;  %v421_v61 = vld [vmem:[#allocation2 + $0x28] sm:$0xff] }
  0x40   : > { %v429_v62 = vld [vmem:[#allocation2 + $0x68] sm:$0xff]  ;;  %v1393_v9 = vld [vmem:[%s1724_s3] sm:$0xff] (!%p1176_p13)   ;;  %v1395_v12 = vld [vmem:[%s1724_s3 + $0x10] sm:$0xff] (!%p1176_p13)  }
  0x41   : > { %1233 = vmatpush3.bf16.msra.mxu0 %v1385_v7  ;;  %1302 = vmatpush3.bf16.msra.mxu1 %v1385_v7  ;;  %v1394_v10 = vld [vmem:[%s1724_s3 + $0x8] sm:$0xff] (!%p1176_p13)   ;;  %v647_v18 = vld [vmem:[%s1580_s24 + $0x10] sm:$0xff] (!%p1176_p13) }
  0x42   : > { %1234 = vmatprep.subr.bf16.mxu0 %v1386_v8  ;;  %1295 = vmatprep.subr.bf16.mxu1 %v1386_v8  ;;  %v1398_v17 = vld [vmem:[%s1724_s3 + $0x28] sm:$0xff] (!%p1176_p13)  }
  0x43   : > { %673 = vperm.xlu1 (!%p1176_p13), %1392, %v647_v18  }
  0x45   : > { %1235 = vmatpush3.bf16.msra.mxu0 %v1386_v8  ;;  %1303 = vmatpush3.bf16.msra.mxu1 %v1386_v8 }
  0x46   : > { %1236 = vmatprep.subr.bf16.mxu0 %v1387_v13  ;;  %1296 = vmatprep.subr.bf16.mxu1 %v1387_v13 }
  0x49   : > { %1237 = vmatpush3.bf16.msra.mxu0 %v1387_v13  ;;  %1304 = vmatpush3.bf16.msra.mxu1 %v1387_v13  ;;  %v1396_v13 = vld [vmem:[%s1724_s3 + $0x18] sm:$0xff] (!%p1176_p13)  }
  0x4a   : > { %1238 = vmatprep.subr.bf16.mxu0 %v1388_v14  ;;  %1297 = vmatprep.subr.bf16.mxu1 %v1388_v14 }
  0x4d   : > { %1239 = vmatpush3.bf16.msra.mxu0 %v1388_v14  ;;  %1305 = vmatpush3.bf16.msra.mxu1 %v1388_v14  ;;  %v1401_v14 = vld [vmem:[%s1575_s18] sm:$0xff] (!%p1176_p13)  }
  0x4e   : > { %1240 = vmatprep.subr.bf16.mxu0 %v1389_v15  ;;  %1298 = vmatprep.subr.bf16.mxu1 %v1389_v15 }
  0x51   : > { %1241 = vmatpush3.bf16.msra.mxu0 %v1389_v15  ;;  %1306 = vmatpush3.bf16.msra.mxu1 %v1389_v15  ;;  %v1402_v15 = vld [vmem:[%s1575_s18 + $0x20] sm:$0xff] (!%p1176_p13)  }
  0x52   : > { %1242 = vmatprep.subr.bf16.mxu0 %v1390_v16  ;;  %1299 = vmatprep.subr.bf16.mxu1 %v1390_v16 }
  0x55   : > { %1243 = vmatpush3.bf16.msra.mxu0 %v1390_v16  ;;  %1307 = vmatpush3.bf16.msra.mxu1 %v1390_v16  ;;  %v1397_v16 = vld [vmem:[%s1724_s3 + $0x20] sm:$0xff] (!%p1176_p13)  }
  0x56   : > { %1260 = vmatprep.subr.bf16.mxu0 (!%p1176_p13), %v1393_v9  ;;  %1308 = vmatprep.subr.bf16.mxu1 (!%p1176_p13), %v1393_v9 }
  0x58   : > { %1245 = vmatmul.mubr.bf16.vlgmr.msra.gmra.mrb[0].mxu0 %v409_v19  ;;  %1253 = vmatmul.mubr.bf16.vlgmr.msra.gmra.mrb[0].mxu1 %v413_v20  ;;  %v645_v19 = vld [vmem:[%s1580_s24] sm:$0xff] (!%p1176_p13)  ;;  %v648_v20 = vld [vmem:[%s1580_s24 + $0x18] sm:$0xff] (!%p1176_p13) }
  0x59   : > { %1248 = vmatprep.mubr.bf16.mxu0 %v410_v21  ;;  %1256 = vmatprep.mubr.bf16.mxu1 %v414_v22  ;;  %v646_v21 = vld [vmem:[%s1580_s24 + $0x8] sm:$0xff] (!%p1176_p13)  ;;  %v1399_v22 = vld [vmem:[%s1724_s3 + $0x30] sm:$0xff] (!%p1176_p13)  }
  0x5a   : > { %1261 = vmatpush3.bf16.msra.mxu0 (!%p1176_p13), %v1393_v9  ;;  %1316 = vmatpush3.bf16.msra.mxu1 (!%p1176_p13), %v1393_v9 }
  0x5b   : > { %1262 = vmatprep.subr.bf16.mxu0 (!%p1176_p13), %v1394_v10  ;;  %1309 = vmatprep.subr.bf16.mxu1 (!%p1176_p13), %v1394_v10 }
  0x5c   : > { %663 = vperm.xlu0 (!%p1176_p13), %1391, %v645_v19   ;;  %678 = vperm.xlu1 (!%p1176_p13), %1392, %v648_v20  }
  0x5e   : > { %1263 = vmatpush3.bf16.msra.mxu0 (!%p1176_p13), %v1394_v10  ;;  %1317 = vmatpush3.bf16.msra.mxu1 (!%p1176_p13), %v1394_v10 }
  0x5f   : > { %1264 = vmatprep.subr.bf16.mxu0 (!%p1176_p13), %v1395_v12  ;;  %1310 = vmatprep.subr.bf16.mxu1 (!%p1176_p13), %v1395_v12 }
  0x60   : > { %1249 = vmatmul.mubr.bf16.gmra.mrb[4].mxu0 %v411_v23  ;;  %1257 = vmatmul.mubr.bf16.gmra.mrb[4].mxu1 %v415_v24  ;;  %v650_v23 = vld [vmem:[%s1580_s24 + $0x28] sm:$0xff] (!%p1176_p13)  ;;  %v649_v24 = vld [vmem:[%s1580_s24 + $0x20] sm:$0xff] (!%p1176_p13) }
  0x61   : > { %1276 = vmatprep.mubr.bf16.mxu0 (!%p1176_p13), %v1401_v14  ;;  %1284 = vmatprep.mubr.bf16.mxu1 (!%p1176_p13), %v1402_v15 }
  0x62   : > { %1265 = vmatpush3.bf16.msra.mxu0 (!%p1176_p13), %v1395_v12  ;;  %1318 = vmatpush3.bf16.msra.mxu1 (!%p1176_p13), %v1395_v12 }
  0x63   : > { %1266 = vmatprep.subr.bf16.mxu0 (!%p1176_p13), %v1396_v13  ;;  %1311 = vmatprep.subr.bf16.mxu1 (!%p1176_p13), %v1396_v13 }
  0x64   : > { %668 = vperm.xlu0 (!%p1176_p13), %1391, %v646_v21   ;;  %688 = vperm.xlu1 (!%p1176_p13), %1392, %v650_v23  }
  0x66   : > { %1267 = vmatpush3.bf16.msra.mxu0 (!%p1176_p13), %v1396_v13  ;;  %1319 = vmatpush3.bf16.msra.mxu1 (!%p1176_p13), %v1396_v13 }
  0x67   : > { %1268 = vmatprep.subr.bf16.mxu0 (!%p1176_p13), %v1397_v16  ;;  %1312 = vmatprep.subr.bf16.mxu1 (!%p1176_p13), %v1397_v16 }
  0x68   : > { %683 = vperm.xlu0 (!%p1176_p13), %1391, %v649_v24  }
  0x6a   : > { %1269 = vmatpush3.bf16.msra.mxu0 (!%p1176_p13), %v1397_v16  ;;  %1320 = vmatpush3.bf16.msra.mxu1 (!%p1176_p13), %v1397_v16 }
  0x6b   : > { %1270 = vmatprep.subr.bf16.mxu0 (!%p1176_p13), %v1398_v17  ;;  %1313 = vmatprep.subr.bf16.mxu1 (!%p1176_p13), %v1398_v17 }
  0x6e   : > { %1271 = vmatpush3.bf16.msra.mxu0 (!%p1176_p13), %v1398_v17  ;;  %1321 = vmatpush3.bf16.msra.mxu1 (!%p1176_p13), %v1398_v17 }
  0x6f   : > { %1272 = vmatprep.subr.bf16.mxu0 (!%p1176_p13), %v1399_v22  ;;  %1314 = vmatprep.subr.bf16.mxu1 (!%p1176_p13), %v1399_v22 }
  0x72   : > { %1273 = vmatpush3.bf16.msra.mxu0 (!%p1176_p13), %v1399_v22  ;;  %1322 = vmatpush3.bf16.msra.mxu1 (!%p1176_p13), %v1399_v22 }
 0x12b   : > { %v1246_v29 = vpop.f32.mrb[0].mxu0  ;;  %v1254_v30 = vpop.f32.mrb[0].mxu1 }
 0x12c   : > { %v595_v33 = vadd.f32 %v1246_v29, %v418_v25  ;;  %v603_v34 = vadd.f32 %v1254_v30, %v426_v26  ;;  %v530_v35 = vpop.f32.mrb[1].mxu0  ;;  %v562_v36 = vpop.f32.mrb[1].mxu1  ;;  %v1400_v25 = vld [vmem:[%s1724_s3 + $0x38] sm:$0xff] (!%p1176_p13)   ;;  %v1404_v29 = vld [vmem:[%s1575_s18 + $0x28] sm:$0xff] (!%p1176_p13)  }
 0x12d   : > { %v593_v39 = vadd.f32 %v530_v35, %v416_v27  ;;  %v601_v40 = vadd.f32 %v562_v36, %v424_v28  ;;  %v1247_v41 = vpop.f32.mrb[2].mxu0  ;;  %v1255_v42 = vpop.f32.mrb[2].mxu1  ;;  %v652_v26 = vld [vmem:[%s1580_s24 + $0x38] sm:$0xff] (!%p1176_p13)  ;;  %v651_v27 = vld [vmem:[%s1580_s24 + $0x30] sm:$0xff] (!%p1176_p13)  ;;  %1274 = vmatprep.subr.bf16.mxu0 (!%p1176_p13), %v1400_v25  ;;  %1315 = vmatprep.subr.bf16.mxu1 (!%p1176_p13), %v1400_v25  ;;  %v1403_v28 = vld [vmem:[%s1575_s18 + $0x8] sm:$0xff] (!%p1176_p13)  }
 0x12e   : > { %611 = vst [vmem:[#allocation2 + $0x10] sm:$0xff] %v595_v33  ;;  %619 = vst [vmem:[#allocation2 + $0x50] sm:$0xff] %v603_v34  ;;  %v596_v43 = vadd.f32 %v1247_v41, %v419_v31  ;;  %v604_v44 = vadd.f32 %v1255_v42, %v427_v32  ;;  %v533_v45 = vpop.f32.mrb[3].mxu0  ;;  %v565_v46 = vpop.f32.mrb[3].mxu1  ;;  %698 = vperm.xlu1 (!%p1176_p13), %1392, %v652_v26   ;;  %693 = vperm.xlu0 (!%p1176_p13), %1391, %v651_v27   ;;  %v654_v30 = vld [vmem:[%s1580_s24 + $0x48] sm:$0xff] (!%p1176_p13)  ;;  %v653_v31 = vld [vmem:[%s1580_s24 + $0x40] sm:$0xff] (!%p1176_p13) }
 0x12f   : > { %609 = vst [vmem:[#allocation2] sm:$0xff] %v593_v39  ;;  %617 = vst [vmem:[#allocation2 + $0x40] sm:$0xff] %v601_v40  ;;  %v594_v47 = vadd.f32 %v533_v45, %v417_v37  ;;  %v602_v48 = vadd.f32 %v565_v46, %v425_v38  ;;  %1275 = vmatpush3.bf16.msra.mxu0 (!%p1176_p13), %v1400_v25  ;;  %1323 = vmatpush3.bf16.msra.mxu1 (!%p1176_p13), %v1400_v25  ;;  %v1405_v32 = vld [vmem:[%s1575_s18 + $0x10] sm:$0xff] (!%p1176_p13)   ;;  %v656_v34 = vld [vmem:[%s1580_s24 + $0x58] sm:$0xff] (!%p1176_p13)  ;;  %v664_v42 = vpop.permute.xlu0 (!%p1176_p13), %663 }
 0x130   : > { %612 = vst [vmem:[#allocation2 + $0x18] sm:$0xff] %v596_v43  ;;  %620 = vst [vmem:[#allocation2 + $0x58] sm:$0xff] %v604_v44  ;;  %v1406_v33 = vld [vmem:[%s1575_s18 + $0x30] sm:$0xff] (!%p1176_p13)   ;;  %v1407_v36 = vld [vmem:[%s1575_s18 + $0x18] sm:$0xff] (!%p1176_p13)   ;;  %v674_v43 = vpop.permute.xlu1 (!%p1176_p13), %673 }
 0x131   : > { %610 = vst [vmem:[#allocation2 + $0x8] sm:$0xff] %v594_v47  ;;  %618 = vst [vmem:[#allocation2 + $0x48] sm:$0xff] %v602_v48  ;;  %v655_v35 = vld [vmem:[%s1580_s24 + $0x50] sm:$0xff] (!%p1176_p13)  ;;  %v1408_v37 = vld [vmem:[%s1575_s18 + $0x38] sm:$0xff] (!%p1176_p13)  }
 0x132   : > { %708 = vperm.xlu1 (!%p1176_p13), %1392, %v654_v30   ;;  %703 = vperm.xlu0 (!%p1176_p13), %1391, %v653_v31   ;;  %v658_v38 = vld [vmem:[%s1580_s24 + $0x68] sm:$0xff] (!%p1176_p13)  ;;  %v657_v39 = vld [vmem:[%s1580_s24 + $0x60] sm:$0xff] (!%p1176_p13)  ;;  %v660_v40 = vld [vmem:[%s1580_s24 + $0x78] sm:$0xff] (!%p1176_p13) }
 0x133   : > { %v1250_v53 = vpop.f32.mrb[4].mxu0  ;;  %v1258_v54 = vpop.f32.mrb[4].mxu1  ;;  %628 = sbr.rel (%p1176_p13) target bundleno = 535 (0x217), region = 90  ;;  %1277 = vmatmul.mubr.bf16.vlgmr.msra.gmra.mrb[0].mxu0 (!%p1176_p13), %v1403_v28  ;;  %1285 = vmatmul.mubr.bf16.vlgmr.msra.gmra.mrb[0].mxu1 (!%p1176_p13), %v1404_v29  ;;  %v659_v41 = vld [vmem:[%s1580_s24 + $0x70] sm:$0xff] (!%p1176_p13) }
 0x134   : > { %v599_v57 = vadd.f32 %v1250_v53, %v422_v49  ;;  %v607_v58 = vadd.f32 %v1258_v54, %v430_v50  ;;  %v546_v59 = vpop.f32.mrb[5].mxu0  ;;  %v578_v60 = vpop.f32.mrb[5].mxu1  ;;  %1280 = vmatprep.mubr.bf16.mxu0 (!%p1176_p13), %v1405_v32  ;;  %1288 = vmatprep.mubr.bf16.mxu1 (!%p1176_p13), %v1406_v33 }
 0x135   : > { %v597_v63 = vadd.f32 %v546_v59, %v420_v51  ;;  %v605_v0 = vadd.f32 %v578_v60, %v428_v52  ;;  %v1251_v1 = vpop.f32.mrb[6].mxu0  ;;  %v1259_v2 = vpop.f32.mrb[6].mxu1  ;;  %v631_v54 = vld [vmem:[#allocation2 + $0x10] sm:$0xff] (!%p1176_p13) }
 0x136   : > { %615 = vst [vmem:[#allocation2 + $0x30] sm:$0xff] %v599_v57  ;;  %623 = vst [vmem:[#allocation2 + $0x70] sm:$0xff] %v607_v58  ;;  %v600_v3 = vadd.f32 %v1251_v1, %v423_v55  ;;  %v608_v4 = vadd.f32 %v1259_v2, %v431_v56  ;;  %v549_v5 = vpop.f32.mrb[7].mxu0  ;;  %v581_v6 = vpop.f32.mrb[7].mxu1  ;;  %718 = vperm.xlu1 (!%p1176_p13), %1392, %v656_v34   ;;  %713 = vperm.xlu0 (!%p1176_p13), %1391, %v655_v35   ;;  %v639_v55 = vld [vmem:[#allocation2 + $0x50] sm:$0xff] (!%p1176_p13)  ;;  %v629_v56 = vld [vmem:[#allocation2] sm:$0xff] (!%p1176_p13) }
 0x137   : > { %613 = vst [vmem:[#allocation2 + $0x20] sm:$0xff] %v597_v63  ;;  %621 = vst [vmem:[#allocation2 + $0x60] sm:$0xff] %v605_v0  ;;  %v598_v7 = vadd.f32 %v549_v5, %v421_v61  ;;  %v606_v8 = vadd.f32 %v581_v6, %v429_v62  ;;  %v669_v44 = vpop.permute.xlu0 (!%p1176_p13), %668  ;;  %v679_v45 = vpop.permute.xlu1 (!%p1176_p13), %678  ;;  %v637_v57 = vld [vmem:[#allocation2 + $0x40] sm:$0xff] (!%p1176_p13)  ;;  %v632_v58 = vld [vmem:[#allocation2 + $0x18] sm:$0xff] (!%p1176_p13)  ;;  %v743_v61 = vmul.f32 (!%p1176_p13), %v674_v43, %v631_v54 }
 0x138   : > { %616 = vst [vmem:[#allocation2 + $0x38] sm:$0xff] %v600_v3  ;;  %624 = vst [vmem:[#allocation2 + $0x78] sm:$0xff] %v608_v4  ;;  %v640_v59 = vld [vmem:[#allocation2 + $0x58] sm:$0xff] (!%p1176_p13)  ;;  %v630_v62 = vld [vmem:[#allocation2 + $0x8] sm:$0xff] (!%p1176_p13)  ;;  %v741_v2 = vmul.f32 (!%p1176_p13), %v664_v42, %v629_v56 }
 0x139   : > { %614 = vst [vmem:[#allocation2 + $0x28] sm:$0xff] %v598_v7  ;;  %622 = vst [vmem:[#allocation2 + $0x68] sm:$0xff] %v606_v8  ;;  %v638_v63 = vld [vmem:[#allocation2 + $0x48] sm:$0xff] (!%p1176_p13)  ;;  %v1662_v5 = vld [vmem:[%s1725_s4] ss:$0 sm:$0xff] (!%p1176_p13)  ;;  %v744_v7 = vmul.f32 (!%p1176_p13), %v679_v45, %v632_v58  ;;  %v742_v13 = vmul.f32 (!%p1176_p13), %v669_v44, %v630_v62 }
 0x13a   : > { %728 = vperm.xlu1 %1392, %v658_v38   ;;  %723 = vperm.xlu0 %1391, %v657_v39  }
 0x13b   : > { %1281 = vmatmul.mubr.bf16.gmra.mrb[4].mxu0 %v1407_v36  ;;  %1289 = vmatmul.mubr.bf16.gmra.mrb[4].mxu1 %v1408_v37  ;;  %v1651_v46 = vpop.permute.xlu0 %683  ;;  %v1653_v47 = vpop.permute.xlu1 %688 }
 0x13d   : > { %v635_v25 = vld [vmem:[#allocation2 + $0x30] sm:$0xff] }
 0x13e   : > { %738 = vperm.xlu1 %1392, %v660_v40   ;;  %733 = vperm.xlu0 %1391, %v659_v41   ;;  %v643_v27 = vld [vmem:[#allocation2 + $0x70] sm:$0xff]  ;;  %v633_v32 = vld [vmem:[#allocation2 + $0x20] sm:$0xff] }
 0x13f   : > { %v641_v33 = vld [vmem:[#allocation2 + $0x60] sm:$0xff]  ;;  %v636_v36 = vld [vmem:[#allocation2 + $0x38] sm:$0xff]  ;;  %v745_v45 = vmul.f32 %v1651_v46, %v633_v32 }
 0x140   : > { %v644_v38 = vld [vmem:[#allocation2 + $0x78] sm:$0xff]  ;;  %v634_v41 = vld [vmem:[#allocation2 + $0x28] sm:$0xff] }
 0x141   : > { %v642_v43 = vld [vmem:[#allocation2 + $0x68] sm:$0xff] }
 0x1ad   : > { %v694_v48 = vpop.permute.xlu0 %693  ;;  %v1655_v49 = vpop.permute.xlu1 %698 }
 0x1ae   : > { %v747_v42 = vmul.f32 %v694_v48, %v635_v25  ;;  %v746_v48 = vmul.f32 %v1653_v47, %v634_v41 }
 0x1b1   : > { %v704_v50 = vpop.permute.xlu0 %703  ;;  %v709_v51 = vpop.permute.xlu1 %708 }
 0x1b2   : > { %v749_v3 = vmul.f32 %v704_v50, %v637_v57  ;;  %v750_v14 = vmul.f32 %v709_v51, %v638_v63 }
 0x1b5   : > { %v714_v52 = vpop.permute.xlu0 %713  ;;  %v719_v53 = vpop.permute.xlu1 %718 }
 0x1b6   : > { %v751_v0 = vmul.f32 %v714_v52, %v639_v55  ;;  %v752_v8 = vmul.f32 %v719_v53, %v640_v59  ;;  %v748_v53 = vmul.f32 %v1655_v49, %v636_v36 }
 0x1b9   : > { %v724_v60 = vpop.permute.xlu0 %723  ;;  %v1657_v1 = vpop.permute.xlu1 %728 }
 0x1ba   : > { %v753_v50 = vmul.f32 %v724_v60, %v641_v33  ;;  %v754_v59 = vmul.f32 %v1657_v1, %v642_v43 }
 0x1bd   : > { %v734_v26 = vpop.permute.xlu0 %733  ;;  %v739_v37 = vpop.permute.xlu1 %738 }
 0x1be   : > { %v755_v44 = vmul.f32 %v734_v26, %v643_v27  ;;  %v756_v54 = vmul.f32 %v739_v37, %v644_v38 }
 0x206   : > { %v1278_v4 = vpop.f32.mrb[0].mxu0  ;;  %v1286_v6 = vpop.f32.mrb[0].mxu1 }
 0x207   : > { %v984_v9 = vadd.f32 %v1278_v4, %v743_v61  ;;  %v992_v10 = vadd.f32 %v1286_v6, %v751_v0  ;;  %v919_v11 = vpop.f32.mrb[1].mxu0  ;;  %v951_v12 = vpop.f32.mrb[1].mxu1 }
 0x208   : > { %v982_v15 = vadd.f32 %v919_v11, %v741_v2  ;;  %v990_v16 = vadd.f32 %v951_v12, %v749_v3  ;;  %v1279_v17 = vpop.f32.mrb[2].mxu0  ;;  %v1287_v18 = vpop.f32.mrb[2].mxu1 }
 0x209   : > { %v1007_v19 = vadd.f32 %v1662_v5, %v984_v9  ;;  %v1015_v20 = vadd.f32 %v1662_v5, %v992_v10  ;;  %v985_v21 = vadd.f32 %v1279_v17, %v744_v7  ;;  %v993_v22 = vadd.f32 %v1287_v18, %v752_v8  ;;  %v922_v23 = vpop.f32.mrb[3].mxu0  ;;  %v954_v24 = vpop.f32.mrb[3].mxu1 }
 0x20a   : > { %v1005_v28 = vadd.f32 %v1662_v5, %v982_v15  ;;  %v1013_v29 = vadd.f32 %v1662_v5, %v990_v16  ;;  %v983_v30 = vadd.f32 %v922_v23, %v742_v13  ;;  %v991_v31 = vadd.f32 %v954_v24, %v750_v14 }
 0x20b   : > { %1023 = vst [vmem:[%s1585_s0 + $0x10] sm:$0xff] %v1007_v19  ;;  %1031 = vst [vmem:[%s1585_s0 + $0x50] sm:$0xff] %v1015_v20  ;;  %v1008_v34 = vadd.f32 %v1662_v5, %v985_v21  ;;  %v1016_v35 = vadd.f32 %v1662_v5, %v993_v22 }
 0x20c   : > { %1021 = vst [vmem:[%s1585_s0] sm:$0xff] %v1005_v28  ;;  %1029 = vst [vmem:[%s1585_s0 + $0x40] sm:$0xff] %v1013_v29  ;;  %v1006_v39 = vadd.f32 %v1662_v5, %v983_v30  ;;  %v1014_v40 = vadd.f32 %v1662_v5, %v991_v31 }
 0x20d   : > { %1024 = vst [vmem:[%s1585_s0 + $0x18] sm:$0xff] %v1008_v34  ;;  %1032 = vst [vmem:[%s1585_s0 + $0x58] sm:$0xff] %v1016_v35 }
 0x20e   : > { %1022 = vst [vmem:[%s1585_s0 + $0x8] sm:$0xff] %v1006_v39  ;;  %1030 = vst [vmem:[%s1585_s0 + $0x48] sm:$0xff] %v1014_v40  ;;  %v1282_v51 = vpop.f32.mrb[4].mxu0  ;;  %v1290_v52 = vpop.f32.mrb[4].mxu1 }
 0x20f   : > { %v988_v55 = vadd.f32 %v1282_v51, %v747_v42  ;;  %v996_v56 = vadd.f32 %v1290_v52, %v755_v44  ;;  %v935_v57 = vpop.f32.mrb[5].mxu0  ;;  %v967_v58 = vpop.f32.mrb[5].mxu1 }
 0x210   : > { %v986_v61 = vadd.f32 %v935_v57, %v745_v45  ;;  %v994_v46 = vadd.f32 %v967_v58, %v753_v50  ;;  %v1283_v60 = vpop.f32.mrb[6].mxu0  ;;  %v1291_v62 = vpop.f32.mrb[6].mxu1 }
 0x211   : > { %v1011_v63 = vadd.f32 %v1662_v5, %v988_v55  ;;  %v1019_v49 = vadd.f32 %v1662_v5, %v996_v56  ;;  %v989_v0 = vadd.f32 %v1283_v60, %v748_v53  ;;  %v997_v2 = vadd.f32 %v1291_v62, %v756_v54  ;;  %v938_v3 = vpop.f32.mrb[7].mxu0  ;;  %v970_v47 = vpop.f32.mrb[7].mxu1 }
 0x212   : > { %v1009_v1 = vadd.f32 %v1662_v5, %v986_v61  ;;  %v1017_v4 = vadd.f32 %v1662_v5, %v994_v46  ;;  %v987_v6 = vadd.f32 %v938_v3, %v746_v48  ;;  %v995_v7 = vadd.f32 %v970_v47, %v754_v59 }
 0x213   : > { %1027 = vst [vmem:[%s1585_s0 + $0x30] sm:$0xff] %v1011_v63  ;;  %1035 = vst [vmem:[%s1585_s0 + $0x70] sm:$0xff] %v1019_v49  ;;  %v1012_v8 = vadd.f32 %v1662_v5, %v989_v0  ;;  %v1020_v9 = vadd.f32 %v1662_v5, %v997_v2 }
 0x214   : > { %1025 = vst [vmem:[%s1585_s0 + $0x20] sm:$0xff] %v1009_v1  ;;  %1033 = vst [vmem:[%s1585_s0 + $0x60] sm:$0xff] %v1017_v4  ;;  %v1010_v10 = vadd.f32 %v1662_v5, %v987_v6  ;;  %v1018_v11 = vadd.f32 %v1662_v5, %v995_v7 }
 0x215   : > { %1028 = vst [vmem:[%s1585_s0 + $0x38] sm:$0xff] %v1012_v8  ;;  %1036 = vst [vmem:[%s1585_s0 + $0x78] sm:$0xff] %v1020_v9 }
 0x216   : > { %1026 = vst [vmem:[%s1585_s0 + $0x28] sm:$0xff] %v1010_v10  ;;  %1034 = vst [vmem:[%s1585_s0 + $0x68] sm:$0xff] %v1018_v11 }
 0x217 PF: > { %s16_s27 = sadd.s32 1, %s1463_s27   ;;  %s1730_s21 = smov %s1443_s22 }
 0x218   : > { %p13_p0 = scmp.ge.s32.totalorder %s16_s27, 11   ;;  %s1731_s22 = smov %s1553_s10 }
 0x219   : > { %s1732_s23 = smov %s1455_s25  ;;  %s1733_s24 = smov %s1459_s26 }
 0x21a   : > { %s1734_s25 = smov %s1737_s28  ;;  %s1735_s26 = smov %s1741_s29 }
 0x21b   :  { %15 = sbr.rel (!%p13_p0) target bundleno = 6 (0x6), region = 134 }

// kernel: sage_forward.2
= control target key start
LH: loop header
LB: loop body
LE: loop exit
PB: predicated region body
PF: predicated region fallthrough
CT: control target
= control target key end

     0   :  { %s1863_s0 = inlined_call_operand.vmem [shape: s8[384,384], index: 0, kind: input, shape index: {}]   ;;  %s1864_s1 = inlined_call_operand.vmem [shape: bf16[384,128], index: 1, kind: input, shape index: {}]   ;;  %s1865_s2 = inlined_call_operand.vmem [shape: bf16[384,128], index: 2, kind: input, shape index: {}]   ;;  %s1866_s3 = inlined_call_operand.vmem [shape: bf16[128,128], index: 3, kind: input, shape index: {}]   ;;  %s1867_s4 = inlined_call_operand.vmem [shape: f32[1,128], index: 4, kind: input, shape index: {}]   ;;  %s1868_s5 = inlined_call_operand.vmem [shape: f32[384,1], index: 5, kind: input, shape index: {}]   ;;  %s1869_s6 = inlined_call_operand.vmem [shape: bf16[384,128], index: 6, kind: output, shape index: {}]  }
   0x1   :  { %1870 = sst [smem:[#allocation4_spill]] %s1863_s0 }
   0x2   :  { %s1661_s21 = smov 0   ;;  %s1663_s22 = smov 0  }
   0x3   :  { %s1665_s23 = smov 0   ;;  %s1667_s24 = smov 0  }
   0x4   :  { %s1669_s25 = smov 0   ;;  %s1671_s26 = smov 0  }
   0x5   :  { %s1673_s27 = smov 0  }
   0x6 LB: > { %s25_s28 = sadd.s32 1, %s1614_s25  ;;  %s28_s29 = sadd.s32 1, %s1618_s26  ;;  %s1622_s27 = sphi %s1673_s27, %s16_s27   ;;  %s1618_s26 = sphi %s1671_s26, %s1877_s26   ;;  %s1614_s25 = sphi %s1669_s25, %s1876_s25   ;;  %s1610_s24 = sphi %s1667_s24, %s1875_s24   ;;  %s1606_s23 = sphi %s1665_s23, %s1874_s23   ;;  %s1602_s22 = sphi %s1663_s22, %s1873_s22   ;;  %s1598_s21 = sphi %s1661_s21, %s1872_s21  }
   0x7   : > { %p26_p0 = scmp.ge.s32.totalorder %s25_s28, 3  ;;  %p44_p1 = scmp.ne.s32.totalorder %s1602_s22, %s1598_s21 }
   0x8   : > { %p45_p2 = scmp.eq.s32.totalorder %s1622_s27, 0  ;;  %s37_s9 = sadd.s32 1, %s1602_s22 }
   0x9   : > { %s1879_s28 = smov (%p26_p0, %s25_s28), 0  ;;  %s1881_s29 = smov (!%p26_p0, %s28_s29), %s1618_s26 }
   0xa   : > { %p46_p3 = por %p45_p2, %p44_p1  ;;  %p30_p4 = scmp.ge.s32.totalorder %s1881_s29, 3 }
   0xb   : > { %s33_s30 = ssub.s32 %s1614_s25, %s1879_s28  ;;  %p1232_p6 = scmp.ge.s32.totalorder %s1622_s27, 9 }
   0xc   : > { %s1883_s29 = smov (%p30_p4, %s1881_s29), 0 }
   0xd   : > { %s32_s7 = ssub.s32 %s1618_s26, %s1883_s29  ;;  %222 = sbr.rel (%p1232_p6) target bundleno = 32 (0x20), region = 24 }
   0xe   : > { %s34_s8 = sor.u32 %s33_s30, %s32_s7 }
   0xf   : > { %p35_p5 = scmp.eq.s32.totalorder %s34_s8, 0 }
  0x11   : > { %s1712_s10 = scalar_select %p35_p5, %s1602_s22, %s37_s9  }
  0x14   : > { %225 = sbr.rel (!%p46_p3) target bundleno = 32 (0x20), region = 28  ;;  %s227_s11 = sand.u32 (%p46_p3), 1, %s1602_s22  }
  0x15   : > { %s1483_s12 = smul.u32 (%p46_p3), 12, %s1618_s26  ;;  %s1233_s13 = sshll.u32 (%p46_p3), %s227_s11, 5 }
  0x16   : > { %s1871_s0 = sld [smem:[#allocation4_spill]] (%p46_p3)  ;;  %s229_s19 = scalar_lea.vmem (%p46_p3), [#allocation3], %s1233_s13 }
  0x17   : > { %s232_s14 = sadd.s32 (%p46_p3), %s1614_s25, %s1483_s12 }
  0x18   : > { %s1236_s15 = sshll.u32 (%p46_p3), %s232_s14, 3 }
  0x1c   : > { %s234_s18 = scalar_lea.vmem %s1871_s0, %s1236_s15 }
  0x1d   : > { %v268_v0 = vld [vmem:[%s234_s18] sm:$0xff]  ;;  %v270_v1 = vld [vmem:[%s234_s18 + $0x18] sm:$0xff]  ;;  %v272_v2 = vld [vmem:[%s234_s18 + $0x30] sm:$0xff] }
  0x1e   : > { %269 = vst [vmem:[%s229_s19] sm:$0xff] %v268_v0  ;;  %271 = vst [vmem:[%s229_s19 + $0x8] sm:$0xff] %v270_v1  ;;  %v274_v3 = vld [vmem:[%s234_s18 + $0x48] sm:$0xff] }
  0x1f   : > { %273 = vst [vmem:[%s229_s19 + $0x10] sm:$0xff] %v272_v2  ;;  %275 = vst [vmem:[%s229_s19 + $0x18] sm:$0xff] %v274_v3 }
  0x20 PF: > { %p1237_p7 = scmp.ge.s32.totalorder %s1622_s27, 1  ;;  %p307_p8 = scmp.lt.s32.totalorder %s1622_s27, 10 }
  0x22   : > { %p308_p9 = pnand %p1237_p7, %p307_p8 }
  0x23   : > { %s314_s20 = sand.u32 (!%p308_p9), 1, %s1598_s21   ;;  %s1239_s30 = sshll.u32 (!%p308_p9), %s1606_s23, 4 }
  0x24   : > { %311 = sbr.rel (%p308_p9) target bundleno = 540 (0x21c), region = 78  ;;  %s1238_s7 = sshll.u32 (!%p308_p9), %s314_s20, 5 }
  0x25   : > { %p360_p10 = scmp.lt.s32.totalorder (!%p308_p9), %s1239_s30, 47  ;;  %s1241_s8 = sshll.u32 (!%p308_p9), %s1610_s24, 4 }
  0x26   : > { %p366_p11 = scmp.lt.s32.totalorder (!%p308_p9), %s1241_s8, 47  ;;  %p1247_p12 = scmp.ne.s32.totalorder (!%p308_p9), %s1606_s23, 0 }
  0x2b   : > { %s1885_s30 = smov (!%p360_p10, %s1239_s30), 47  ;;  %s1887_s8 = smov (!%p366_p11, %s1241_s8), 47 }
  0x2c   : > { %s1240_s9 = sshll.u32 %s1885_s30, 2  ;;  %s1242_s14 = sshll.u32 %s1887_s8, 2  ;;  %v1624_v4 = vmov (!%p1247_p12), 0.0  }
  0x2d   : > { %s1729_s13 = scalar_lea.vmem %s1864_s1, %s1240_s9  ;;  %s1244_s15 = sshll.u32 %s1887_s8, 3  ;;  %388 = vst [vmem:[#allocation2] sm:$0xff] (!%p1247_p12), %v1624_v4  ;;  %389 = vst [vmem:[#allocation2 + $0x8] sm:$0xff] (!%p1247_p12), %v1624_v4 }
  0x2e   : > { %s1734_s18 = scalar_lea.vmem %s1865_s2, %s1242_s14  ;;  %s1739_s24 = scalar_lea.vmem %s1868_s5, %s1244_s15  ;;  %390 = vst [vmem:[#allocation2 + $0x10] sm:$0xff] (!%p1247_p12), %v1624_v4  ;;  %391 = vst [vmem:[#allocation2 + $0x18] sm:$0xff] (!%p1247_p12), %v1624_v4 }
  0x2f   : > { %s1744_s0 = scalar_lea.vmem %s1869_s6, %s1242_s14  ;;  %s1746_s9 = scalar_lea.vmem [#allocation3], %s1238_s7  ;;  %392 = vst [vmem:[#allocation2 + $0x20] sm:$0xff] (!%p1247_p12), %v1624_v4  ;;  %393 = vst [vmem:[#allocation2 + $0x28] sm:$0xff] (!%p1247_p12), %v1624_v4 }
  0x30   : > { %387 = sbr.rel (%p1247_p12) target bundleno = 55 (0x37), region = 86  ;;  %394 = vst [vmem:[#allocation2 + $0x30] sm:$0xff] (!%p1247_p12), %v1624_v4  ;;  %395 = vst [vmem:[#allocation2 + $0x38] sm:$0xff] (!%p1247_p12), %v1624_v4 }
  0x31   : > { %396 = vst [vmem:[#allocation2 + $0x40] sm:$0xff] (!%p1247_p12), %v1624_v4  ;;  %397 = vst [vmem:[#allocation2 + $0x48] sm:$0xff] (!%p1247_p12), %v1624_v4 }
  0x32   : > { %398 = vst [vmem:[#allocation2 + $0x50] sm:$0xff] (!%p1247_p12), %v1624_v4  ;;  %399 = vst [vmem:[#allocation2 + $0x58] sm:$0xff] (!%p1247_p12), %v1624_v4 }
  0x33   : > { %400 = vst [vmem:[#allocation2 + $0x60] sm:$0xff] (!%p1247_p12), %v1624_v4  ;;  %401 = vst [vmem:[#allocation2 + $0x68] sm:$0xff] (!%p1247_p12), %v1624_v4 }
  0x34   : > { %402 = vst [vmem:[#allocation2 + $0x70] sm:$0xff] (!%p1247_p12), %v1624_v4  ;;  %403 = vst [vmem:[#allocation2 + $0x78] sm:$0xff] (!%p1247_p12), %v1624_v4 }
  0x37 PF: > { %v1542_v5 = vld [vmem:[%s1729_s13] sm:$0xff]   ;;  %v1543_v6 = vld [vmem:[%s1729_s13 + $0x8] sm:$0xff]   ;;  %v1544_v7 = vld [vmem:[%s1729_s13 + $0x10] sm:$0xff]   ;;  %p1256_p13 = scmp.ne.s32.totalorder %s1606_s23, 2 }
  0x38   : > { %1387 = vmatprep.subr.bf16.mxu0 %v1542_v5  ;;  %1451 = vmatprep.subr.bf16.mxu1 %v1542_v5  ;;  %v1545_v8 = vld [vmem:[%s1729_s13 + $0x18] sm:$0xff]   ;;  %v404_v9 = vld [vmem:[%s1746_s9] sm:$0xff]  ;;  %v406_v10 = vld [vmem:[%s1746_s9 + $0x10] sm:$0xff] }
  0x39   : > { %1388 = vmatpush3.bf16.msra.mxu0 %v1542_v5  ;;  %1459 = vmatpush3.bf16.msra.mxu1 %v1542_v5  ;;  %v408_v11 = vunpack.c.l.s8.bf16 %v404_v9  ;;  %v412_v12 = vunpack.c.l.s8.bf16 %v406_v10  ;;  %v1546_v13 = vld [vmem:[%s1729_s13 + $0x20] sm:$0xff]   ;;  %v1547_v14 = vld [vmem:[%s1729_s13 + $0x28] sm:$0xff]   ;;  %v1548_v15 = vld [vmem:[%s1729_s13 + $0x30] sm:$0xff]   ;;  %v409_v19 = vunpack.c.h.s8.bf16 %v404_v9  ;;  %v413_v20 = vunpack.c.h.s8.bf16 %v406_v10 }
  0x3a   : > { %1389 = vmatprep.subr.bf16.mxu0 %v1543_v6  ;;  %1452 = vmatprep.subr.bf16.mxu1 %v1543_v6  ;;  %v1549_v16 = vld [vmem:[%s1729_s13 + $0x38] sm:$0xff]   ;;  %v405_v17 = vld [vmem:[%s1746_s9 + $0x8] sm:$0xff]  ;;  %v418_v25 = vld [vmem:[#allocation2 + $0x10] sm:$0xff] }
  0x3b   : > { %1403 = vmatprep.mubr.bf16.mxu0 %v408_v11  ;;  %1411 = vmatprep.mubr.bf16.mxu1 %v412_v12  ;;  %v407_v18 = vld [vmem:[%s1746_s9 + $0x18] sm:$0xff]  ;;  %v410_v21 = vunpack.c.l.s8.bf16 %v405_v17  ;;  %v411_v23 = vunpack.c.h.s8.bf16 %v405_v17  ;;  %v426_v26 = vld [vmem:[#allocation2 + $0x50] sm:$0xff]  ;;  %v416_v27 = vld [vmem:[#allocation2] sm:$0xff]  ;;  %v1625_v11 = vmov (!%p1256_p13), 0  }
  0x3c   : > { %v414_v22 = vunpack.c.l.s8.bf16 %v407_v18  ;;  %v415_v24 = vunpack.c.h.s8.bf16 %v407_v18  ;;  %v424_v28 = vld [vmem:[#allocation2 + $0x40] sm:$0xff]  ;;  %v419_v31 = vld [vmem:[#allocation2 + $0x18] sm:$0xff]  ;;  %v417_v37 = vld [vmem:[#allocation2 + $0x8] sm:$0xff]  ;;  %1551 = vset.pattern.permute.xlu1 (!%p1256_p13), %v1625_v11  ;;  %1550 = vset.pattern.permute.xlu0 (!%p1256_p13), %v1625_v11 }
  0x3d   : > { %1390 = vmatpush3.bf16.msra.mxu0 %v1543_v6  ;;  %1460 = vmatpush3.bf16.msra.mxu1 %v1543_v6  ;;  %v427_v32 = vld [vmem:[#allocation2 + $0x58] sm:$0xff]  ;;  %v425_v38 = vld [vmem:[#allocation2 + $0x48] sm:$0xff]  ;;  %v422_v49 = vld [vmem:[#allocation2 + $0x30] sm:$0xff] }
  0x3e   : > { %1391 = vmatprep.subr.bf16.mxu0 %v1544_v7  ;;  %1453 = vmatprep.subr.bf16.mxu1 %v1544_v7  ;;  %v430_v50 = vld [vmem:[#allocation2 + $0x70] sm:$0xff]  ;;  %v420_v51 = vld [vmem:[#allocation2 + $0x20] sm:$0xff]  ;;  %v423_v55 = vld [vmem:[#allocation2 + $0x38] sm:$0xff] }
  0x3f   : > { %v428_v52 = vld [vmem:[#allocation2 + $0x60] sm:$0xff]  ;;  %v431_v56 = vld [vmem:[#allocation2 + $0x78] sm:$0xff]  ;;  %v421_v61 = vld [vmem:[#allocation2 + $0x28] sm:$0xff] }
  0x40   : > { %v429_v62 = vld [vmem:[#allocation2 + $0x68] sm:$0xff]  ;;  %v1552_v9 = vld [vmem:[%s1866_s3] sm:$0xff] (!%p1256_p13)   ;;  %v1554_v12 = vld [vmem:[%s1866_s3 + $0x10] sm:$0xff] (!%p1256_p13)  }
  0x41   : > { %1392 = vmatpush3.bf16.msra.mxu0 %v1544_v7  ;;  %1461 = vmatpush3.bf16.msra.mxu1 %v1544_v7  ;;  %v1553_v10 = vld [vmem:[%s1866_s3 + $0x8] sm:$0xff] (!%p1256_p13)   ;;  %v647_v18 = vld [vmem:[%s1739_s24 + $0x10] sm:$0xff] (!%p1256_p13) }
  0x42   : > { %1393 = vmatprep.subr.bf16.mxu0 %v1545_v8  ;;  %1454 = vmatprep.subr.bf16.mxu1 %v1545_v8  ;;  %v1557_v17 = vld [vmem:[%s1866_s3 + $0x28] sm:$0xff] (!%p1256_p13)  }
  0x43   : > { %673 = vperm.xlu1 (!%p1256_p13), %1551, %v647_v18  }
  0x45   : > { %1394 = vmatpush3.bf16.msra.mxu0 %v1545_v8  ;;  %1462 = vmatpush3.bf16.msra.mxu1 %v1545_v8 }
  0x46   : > { %1395 = vmatprep.subr.bf16.mxu0 %v1546_v13  ;;  %1455 = vmatprep.subr.bf16.mxu1 %v1546_v13 }
  0x49   : > { %1396 = vmatpush3.bf16.msra.mxu0 %v1546_v13  ;;  %1463 = vmatpush3.bf16.msra.mxu1 %v1546_v13  ;;  %v1555_v13 = vld [vmem:[%s1866_s3 + $0x18] sm:$0xff] (!%p1256_p13)  }
  0x4a   : > { %1397 = vmatprep.subr.bf16.mxu0 %v1547_v14  ;;  %1456 = vmatprep.subr.bf16.mxu1 %v1547_v14 }
  0x4d   : > { %1398 = vmatpush3.bf16.msra.mxu0 %v1547_v14  ;;  %1464 = vmatpush3.bf16.msra.mxu1 %v1547_v14  ;;  %v1560_v14 = vld [vmem:[%s1734_s18] sm:$0xff] (!%p1256_p13)  }
  0x4e   : > { %1399 = vmatprep.subr.bf16.mxu0 %v1548_v15  ;;  %1457 = vmatprep.subr.bf16.mxu1 %v1548_v15 }
  0x51   : > { %1400 = vmatpush3.bf16.msra.mxu0 %v1548_v15  ;;  %1465 = vmatpush3.bf16.msra.mxu1 %v1548_v15  ;;  %v1561_v15 = vld [vmem:[%s1734_s18 + $0x20] sm:$0xff] (!%p1256_p13)  }
  0x52   : > { %1401 = vmatprep.subr.bf16.mxu0 %v1549_v16  ;;  %1458 = vmatprep.subr.bf16.mxu1 %v1549_v16 }
  0x55   : > { %1402 = vmatpush3.bf16.msra.mxu0 %v1549_v16  ;;  %1466 = vmatpush3.bf16.msra.mxu1 %v1549_v16  ;;  %v1556_v16 = vld [vmem:[%s1866_s3 + $0x20] sm:$0xff] (!%p1256_p13)  }
  0x56   : > { %1419 = vmatprep.subr.bf16.mxu0 (!%p1256_p13), %v1552_v9  ;;  %1467 = vmatprep.subr.bf16.mxu1 (!%p1256_p13), %v1552_v9 }
  0x58   : > { %1404 = vmatmul.mubr.bf16.vlgmr.msra.gmra.mrb[0].mxu0 %v409_v19  ;;  %1412 = vmatmul.mubr.bf16.vlgmr.msra.gmra.mrb[0].mxu1 %v413_v20  ;;  %v645_v19 = vld [vmem:[%s1739_s24] sm:$0xff] (!%p1256_p13)  ;;  %v648_v20 = vld [vmem:[%s1739_s24 + $0x18] sm:$0xff] (!%p1256_p13) }
  0x59   : > { %1407 = vmatprep.mubr.bf16.mxu0 %v410_v21  ;;  %1415 = vmatprep.mubr.bf16.mxu1 %v414_v22  ;;  %v646_v21 = vld [vmem:[%s1739_s24 + $0x8] sm:$0xff] (!%p1256_p13)  ;;  %v1558_v22 = vld [vmem:[%s1866_s3 + $0x30] sm:$0xff] (!%p1256_p13)  }
  0x5a   : > { %1420 = vmatpush3.bf16.msra.mxu0 (!%p1256_p13), %v1552_v9  ;;  %1475 = vmatpush3.bf16.msra.mxu1 (!%p1256_p13), %v1552_v9 }
  0x5b   : > { %1421 = vmatprep.subr.bf16.mxu0 (!%p1256_p13), %v1553_v10  ;;  %1468 = vmatprep.subr.bf16.mxu1 (!%p1256_p13), %v1553_v10 }
  0x5c   : > { %663 = vperm.xlu0 (!%p1256_p13), %1550, %v645_v19   ;;  %678 = vperm.xlu1 (!%p1256_p13), %1551, %v648_v20  }
  0x5e   : > { %1422 = vmatpush3.bf16.msra.mxu0 (!%p1256_p13), %v1553_v10  ;;  %1476 = vmatpush3.bf16.msra.mxu1 (!%p1256_p13), %v1553_v10 }
  0x5f   : > { %1423 = vmatprep.subr.bf16.mxu0 (!%p1256_p13), %v1554_v12  ;;  %1469 = vmatprep.subr.bf16.mxu1 (!%p1256_p13), %v1554_v12 }
  0x60   : > { %1408 = vmatmul.mubr.bf16.gmra.mrb[4].mxu0 %v411_v23  ;;  %1416 = vmatmul.mubr.bf16.gmra.mrb[4].mxu1 %v415_v24  ;;  %v650_v23 = vld [vmem:[%s1739_s24 + $0x28] sm:$0xff] (!%p1256_p13)  ;;  %v649_v24 = vld [vmem:[%s1739_s24 + $0x20] sm:$0xff] (!%p1256_p13) }
  0x61   : > { %1435 = vmatprep.mubr.bf16.mxu0 (!%p1256_p13), %v1560_v14  ;;  %1443 = vmatprep.mubr.bf16.mxu1 (!%p1256_p13), %v1561_v15  ;;  %v1815_v15 = vld [vmem:[%s1867_s4] ss:$0 sm:$0xff] (!%p1256_p13) }
  0x62   : > { %1424 = vmatpush3.bf16.msra.mxu0 (!%p1256_p13), %v1554_v12  ;;  %1477 = vmatpush3.bf16.msra.mxu1 (!%p1256_p13), %v1554_v12 }
  0x63   : > { %1425 = vmatprep.subr.bf16.mxu0 (!%p1256_p13), %v1555_v13  ;;  %1470 = vmatprep.subr.bf16.mxu1 (!%p1256_p13), %v1555_v13 }
  0x64   : > { %668 = vperm.xlu0 (!%p1256_p13), %1550, %v646_v21   ;;  %688 = vperm.xlu1 (!%p1256_p13), %1551, %v650_v23  }
  0x66   : > { %1426 = vmatpush3.bf16.msra.mxu0 (!%p1256_p13), %v1555_v13  ;;  %1478 = vmatpush3.bf16.msra.mxu1 (!%p1256_p13), %v1555_v13 }
  0x67   : > { %1427 = vmatprep.subr.bf16.mxu0 (!%p1256_p13), %v1556_v16  ;;  %1471 = vmatprep.subr.bf16.mxu1 (!%p1256_p13), %v1556_v16 }
  0x68   : > { %683 = vperm.xlu0 (!%p1256_p13), %1550, %v649_v24  }
  0x6a   : > { %1428 = vmatpush3.bf16.msra.mxu0 (!%p1256_p13), %v1556_v16  ;;  %1479 = vmatpush3.bf16.msra.mxu1 (!%p1256_p13), %v1556_v16 }
  0x6b   : > { %1429 = vmatprep.subr.bf16.mxu0 (!%p1256_p13), %v1557_v17  ;;  %1472 = vmatprep.subr.bf16.mxu1 (!%p1256_p13), %v1557_v17 }
  0x6e   : > { %1430 = vmatpush3.bf16.msra.mxu0 (!%p1256_p13), %v1557_v17  ;;  %1480 = vmatpush3.bf16.msra.mxu1 (!%p1256_p13), %v1557_v17 }
  0x6f   : > { %1431 = vmatprep.subr.bf16.mxu0 (!%p1256_p13), %v1558_v22  ;;  %1473 = vmatprep.subr.bf16.mxu1 (!%p1256_p13), %v1558_v22 }
  0x72   : > { %1432 = vmatpush3.bf16.msra.mxu0 (!%p1256_p13), %v1558_v22  ;;  %1481 = vmatpush3.bf16.msra.mxu1 (!%p1256_p13), %v1558_v22 }
 0x12b   : > { %v1405_v29 = vpop.f32.mrb[0].mxu0  ;;  %v1413_v30 = vpop.f32.mrb[0].mxu1 }
 0x12c   : > { %v595_v33 = vadd.f32 %v1405_v29, %v418_v25  ;;  %v603_v34 = vadd.f32 %v1413_v30, %v426_v26  ;;  %v530_v35 = vpop.f32.mrb[1].mxu0  ;;  %v562_v36 = vpop.f32.mrb[1].mxu1  ;;  %v1559_v25 = vld [vmem:[%s1866_s3 + $0x38] sm:$0xff] (!%p1256_p13)   ;;  %v1563_v29 = vld [vmem:[%s1734_s18 + $0x28] sm:$0xff] (!%p1256_p13)  }
 0x12d   : > { %v593_v39 = vadd.f32 %v530_v35, %v416_v27  ;;  %v601_v40 = vadd.f32 %v562_v36, %v424_v28  ;;  %v1406_v41 = vpop.f32.mrb[2].mxu0  ;;  %v1414_v42 = vpop.f32.mrb[2].mxu1  ;;  %v652_v26 = vld [vmem:[%s1739_s24 + $0x38] sm:$0xff] (!%p1256_p13)  ;;  %v651_v27 = vld [vmem:[%s1739_s24 + $0x30] sm:$0xff] (!%p1256_p13)  ;;  %1433 = vmatprep.subr.bf16.mxu0 (!%p1256_p13), %v1559_v25  ;;  %1474 = vmatprep.subr.bf16.mxu1 (!%p1256_p13), %v1559_v25  ;;  %v1562_v28 = vld [vmem:[%s1734_s18 + $0x8] sm:$0xff] (!%p1256_p13)  }
 0x12e   : > { %611 = vst [vmem:[#allocation2 + $0x10] sm:$0xff] %v595_v33  ;;  %619 = vst [vmem:[#allocation2 + $0x50] sm:$0xff] %v603_v34  ;;  %v596_v43 = vadd.f32 %v1406_v41, %v419_v31  ;;  %v604_v44 = vadd.f32 %v1414_v42, %v427_v32  ;;  %v533_v45 = vpop.f32.mrb[3].mxu0  ;;  %v565_v46 = vpop.f32.mrb[3].mxu1  ;;  %698 = vperm.xlu1 (!%p1256_p13), %1551, %v652_v26   ;;  %693 = vperm.xlu0 (!%p1256_p13), %1550, %v651_v27   ;;  %v654_v30 = vld [vmem:[%s1739_s24 + $0x48] sm:$0xff] (!%p1256_p13)  ;;  %v653_v31 = vld [vmem:[%s1739_s24 + $0x40] sm:$0xff] (!%p1256_p13) }
 0x12f   : > { %609 = vst [vmem:[#allocation2] sm:$0xff] %v593_v39  ;;  %617 = vst [vmem:[#allocation2 + $0x40] sm:$0xff] %v601_v40  ;;  %v594_v47 = vadd.f32 %v533_v45, %v417_v37  ;;  %v602_v48 = vadd.f32 %v565_v46, %v425_v38  ;;  %1434 = vmatpush3.bf16.msra.mxu0 (!%p1256_p13), %v1559_v25  ;;  %1482 = vmatpush3.bf16.msra.mxu1 (!%p1256_p13), %v1559_v25  ;;  %v1564_v32 = vld [vmem:[%s1734_s18 + $0x10] sm:$0xff] (!%p1256_p13)   ;;  %v656_v34 = vld [vmem:[%s1739_s24 + $0x58] sm:$0xff] (!%p1256_p13)  ;;  %v674_v42 = vpop.permute.xlu1 (!%p1256_p13), %673 }
 0x130   : > { %612 = vst [vmem:[#allocation2 + $0x18] sm:$0xff] %v596_v43  ;;  %620 = vst [vmem:[#allocation2 + $0x58] sm:$0xff] %v604_v44  ;;  %v1565_v33 = vld [vmem:[%s1734_s18 + $0x30] sm:$0xff] (!%p1256_p13)   ;;  %v1566_v36 = vld [vmem:[%s1734_s18 + $0x18] sm:$0xff] (!%p1256_p13)   ;;  %v664_v43 = vpop.permute.xlu0 (!%p1256_p13), %663 }
 0x131   : > { %610 = vst [vmem:[#allocation2 + $0x8] sm:$0xff] %v594_v47  ;;  %618 = vst [vmem:[#allocation2 + $0x48] sm:$0xff] %v602_v48  ;;  %v655_v35 = vld [vmem:[%s1739_s24 + $0x50] sm:$0xff] (!%p1256_p13)  ;;  %v1567_v37 = vld [vmem:[%s1734_s18 + $0x38] sm:$0xff] (!%p1256_p13)  }
 0x132   : > { %708 = vperm.xlu1 (!%p1256_p13), %1551, %v654_v30   ;;  %703 = vperm.xlu0 (!%p1256_p13), %1550, %v653_v31   ;;  %v658_v38 = vld [vmem:[%s1739_s24 + $0x68] sm:$0xff] (!%p1256_p13)  ;;  %v657_v39 = vld [vmem:[%s1739_s24 + $0x60] sm:$0xff] (!%p1256_p13)  ;;  %v660_v40 = vld [vmem:[%s1739_s24 + $0x78] sm:$0xff] (!%p1256_p13) }
 0x133   : > { %v1409_v53 = vpop.f32.mrb[4].mxu0  ;;  %v1417_v54 = vpop.f32.mrb[4].mxu1  ;;  %628 = sbr.rel (%p1256_p13) target bundleno = 540 (0x21c), region = 90  ;;  %1436 = vmatmul.mubr.bf16.vlgmr.msra.gmra.mrb[0].mxu0 (!%p1256_p13), %v1562_v28  ;;  %1444 = vmatmul.mubr.bf16.vlgmr.msra.gmra.mrb[0].mxu1 (!%p1256_p13), %v1563_v29  ;;  %v659_v41 = vld [vmem:[%s1739_s24 + $0x70] sm:$0xff] (!%p1256_p13) }
 0x134   : > { %v599_v57 = vadd.f32 %v1409_v53, %v422_v49  ;;  %v607_v58 = vadd.f32 %v1417_v54, %v430_v50  ;;  %v546_v59 = vpop.f32.mrb[5].mxu0  ;;  %v578_v60 = vpop.f32.mrb[5].mxu1  ;;  %1439 = vmatprep.mubr.bf16.mxu0 (!%p1256_p13), %v1564_v32  ;;  %1447 = vmatprep.mubr.bf16.mxu1 (!%p1256_p13), %v1565_v33 }
 0x135   : > { %v597_v63 = vadd.f32 %v546_v59, %v420_v51  ;;  %v605_v0 = vadd.f32 %v578_v60, %v428_v52  ;;  %v1410_v1 = vpop.f32.mrb[6].mxu0  ;;  %v1418_v2 = vpop.f32.mrb[6].mxu1  ;;  %v639_v60 = vld [vmem:[#allocation2 + $0x50] sm:$0xff] (!%p1256_p13) }
 0x136   : > { %615 = vst [vmem:[#allocation2 + $0x30] sm:$0xff] %v599_v57  ;;  %623 = vst [vmem:[#allocation2 + $0x70] sm:$0xff] %v607_v58  ;;  %v600_v3 = vadd.f32 %v1410_v1, %v423_v55  ;;  %v608_v4 = vadd.f32 %v1418_v2, %v431_v56  ;;  %v549_v5 = vpop.f32.mrb[7].mxu0  ;;  %v581_v6 = vpop.f32.mrb[7].mxu1  ;;  %718 = vperm.xlu1 (!%p1256_p13), %1551, %v656_v34   ;;  %713 = vperm.xlu0 (!%p1256_p13), %1550, %v655_v35   ;;  %v631_v56 = vld [vmem:[#allocation2 + $0x10] sm:$0xff] (!%p1256_p13)  ;;  %v629_v57 = vld [vmem:[#allocation2] sm:$0xff] (!%p1256_p13) }
 0x137   : > { %613 = vst [vmem:[#allocation2 + $0x20] sm:$0xff] %v597_v63  ;;  %621 = vst [vmem:[#allocation2 + $0x60] sm:$0xff] %v605_v0  ;;  %v598_v7 = vadd.f32 %v549_v5, %v421_v61  ;;  %v606_v8 = vadd.f32 %v581_v6, %v429_v62  ;;  %v679_v44 = vpop.permute.xlu1 (!%p1256_p13), %678  ;;  %v669_v45 = vpop.permute.xlu0 (!%p1256_p13), %668  ;;  %v632_v58 = vld [vmem:[#allocation2 + $0x18] sm:$0xff] (!%p1256_p13)  ;;  %v637_v63 = vld [vmem:[#allocation2 + $0x40] sm:$0xff] (!%p1256_p13)  ;;  %v743_v2 = vmul.f32 (!%p1256_p13), %v674_v42, %v631_v56 }
 0x138   : > { %616 = vst [vmem:[#allocation2 + $0x38] sm:$0xff] %v600_v3  ;;  %624 = vst [vmem:[#allocation2 + $0x78] sm:$0xff] %v608_v4  ;;  %v630_v59 = vld [vmem:[#allocation2 + $0x8] sm:$0xff] (!%p1256_p13)  ;;  %v640_v1 = vld [vmem:[#allocation2 + $0x58] sm:$0xff] (!%p1256_p13)  ;;  %v741_v3 = vmul.f32 (!%p1256_p13), %v664_v43, %v629_v57  ;;  %v744_v4 = vmul.f32 (!%p1256_p13), %v679_v44, %v632_v58 }
 0x139   : > { %614 = vst [vmem:[#allocation2 + $0x28] sm:$0xff] %v598_v7  ;;  %622 = vst [vmem:[#allocation2 + $0x68] sm:$0xff] %v606_v8  ;;  %v638_v6 = vld [vmem:[#allocation2 + $0x48] sm:$0xff] (!%p1256_p13)  ;;  %v742_v10 = vmul.f32 (!%p1256_p13), %v669_v45, %v630_v59 }
 0x13a   : > { %728 = vperm.xlu1 %1551, %v658_v38   ;;  %723 = vperm.xlu0 %1550, %v657_v39  }
 0x13b   : > { %1440 = vmatmul.mubr.bf16.gmra.mrb[4].mxu0 %v1566_v36  ;;  %1448 = vmatmul.mubr.bf16.gmra.mrb[4].mxu1 %v1567_v37  ;;  %v689_v46 = vpop.permute.xlu1 %688  ;;  %v684_v47 = vpop.permute.xlu0 %683 }
 0x13d   : > { %v635_v5 = vld [vmem:[#allocation2 + $0x30] sm:$0xff] }
 0x13e   : > { %738 = vperm.xlu1 %1551, %v660_v40   ;;  %733 = vperm.xlu0 %1550, %v659_v41   ;;  %v633_v62 = vld [vmem:[#allocation2 + $0x20] sm:$0xff]  ;;  %v643_v32 = vld [vmem:[#allocation2 + $0x70] sm:$0xff] }
 0x13f   : > { %v636_v0 = vld [vmem:[#allocation2 + $0x38] sm:$0xff]  ;;  %v745_v12 = vmul.f32 %v684_v47, %v633_v62  ;;  %v641_v26 = vld [vmem:[#allocation2 + $0x60] sm:$0xff] }
 0x140   : > { %v634_v61 = vld [vmem:[#allocation2 + $0x28] sm:$0xff]  ;;  %v644_v31 = vld [vmem:[#allocation2 + $0x78] sm:$0xff] }
 0x141   : > { %v1810_v11 = vmul.f32 %v689_v46, %v634_v61  ;;  %v642_v25 = vld [vmem:[#allocation2 + $0x68] sm:$0xff] }
 0x1ad   : > { %v699_v48 = vpop.permute.xlu1 %698  ;;  %v694_v49 = vpop.permute.xlu0 %693 }
 0x1ae   : > { %v748_v17 = vmul.f32 %v699_v48, %v636_v0  ;;  %v747_v23 = vmul.f32 %v694_v49, %v635_v5 }
 0x1b1   : > { %v709_v50 = vpop.permute.xlu1 %708  ;;  %v704_v51 = vpop.permute.xlu0 %703 }
 0x1b2   : > { %v749_v13 = vmul.f32 %v704_v51, %v637_v63  ;;  %v750_v24 = vmul.f32 %v709_v50, %v638_v6 }
 0x1b5   : > { %v719_v52 = vpop.permute.xlu1 %718  ;;  %v714_v53 = vpop.permute.xlu0 %713 }
 0x1b6   : > { %v751_v7 = vmul.f32 %v714_v53, %v639_v60  ;;  %v752_v18 = vmul.f32 %v719_v52, %v640_v1 }
 0x1b9   : > { %v729_v54 = vpop.permute.xlu1 %728  ;;  %v724_v55 = vpop.permute.xlu0 %723 }
 0x1ba   : > { %v754_v43 = vmul.f32 %v729_v54, %v642_v25  ;;  %v753_v44 = vmul.f32 %v724_v55, %v641_v26 }
 0x1bd   : > { %v739_v8 = vpop.permute.xlu1 %738  ;;  %v734_v9 = vpop.permute.xlu0 %733 }
 0x1be   : > { %v756_v47 = vmul.f32 %v739_v8, %v644_v31  ;;  %v755_v48 = vmul.f32 %v734_v9, %v643_v32 }
 0x206   : > { %v1437_v14 = vpop.f32.mrb[0].mxu0  ;;  %v1445_v16 = vpop.f32.mrb[0].mxu1 }
 0x207   : > { %v984_v19 = vadd.f32 %v1437_v14, %v743_v2  ;;  %v992_v20 = vadd.f32 %v1445_v16, %v751_v7  ;;  %v919_v21 = vpop.f32.mrb[1].mxu0  ;;  %v951_v22 = vpop.f32.mrb[1].mxu1 }
 0x208   : > { %v982_v27 = vadd.f32 %v919_v21, %v741_v3  ;;  %v990_v28 = vadd.f32 %v951_v22, %v749_v13  ;;  %v1438_v29 = vpop.f32.mrb[2].mxu0  ;;  %v1446_v30 = vpop.f32.mrb[2].mxu1 }
 0x209   : > { %v1007_v33 = vadd.f32 %v1815_v15, %v984_v19  ;;  %v1015_v34 = vadd.f32 %v1815_v15, %v992_v20  ;;  %v985_v35 = vadd.f32 %v1438_v29, %v744_v4  ;;  %v993_v36 = vadd.f32 %v1446_v30, %v752_v18  ;;  %v922_v37 = vpop.f32.mrb[3].mxu0  ;;  %v954_v38 = vpop.f32.mrb[3].mxu1 }
 0x20a   : > { %v1005_v39 = vadd.f32 %v1815_v15, %v982_v27  ;;  %v1013_v40 = vadd.f32 %v1815_v15, %v990_v28  ;;  %v983_v41 = vadd.f32 %v922_v37, %v742_v10  ;;  %v991_v42 = vadd.f32 %v954_v38, %v750_v24 }
 0x20b   : > { %v1008_v45 = vadd.f32 %v1815_v15, %v985_v35  ;;  %v1016_v46 = vadd.f32 %v1815_v15, %v993_v36  ;;  %v1023_v51 = vmax.f32 %v1007_v33, 0.0  ;;  %v1031_v52 = vmax.f32 %v1015_v34, 0.0 }
 0x20c   : > { %v1006_v49 = vadd.f32 %v1815_v15, %v983_v41  ;;  %v1014_v50 = vadd.f32 %v1815_v15, %v991_v42  ;;  %v1021_v57 = vmax.f32 %v1005_v39, 0.0  ;;  %v1029_v58 = vmax.f32 %v1013_v40, 0.0 }
 0x20d   : > { %v1024_v53 = vmax.f32 %v1008_v45, 0.0  ;;  %v1032_v56 = vmax.f32 %v1016_v46, 0.0 }
 0x20e   : > { %v1022_v59 = vmax.f32 %v1006_v49, 0.0  ;;  %v1030_v54 = vmax.f32 %v1014_v50, 0.0  ;;  %v1441_v55 = vpop.f32.mrb[4].mxu0  ;;  %v1449_v60 = vpop.f32.mrb[4].mxu1 }
 0x20f   : > { %v1316_v61 = vpack.c.bf16 %v1024_v53, %v1023_v51  ;;  %v1336_v62 = vpack.c.bf16 %v1032_v56, %v1031_v52  ;;  %v988_v63 = vadd.f32 %v1441_v55, %v747_v23  ;;  %v996_v0 = vadd.f32 %v1449_v60, %v755_v48  ;;  %v935_v1 = vpop.f32.mrb[5].mxu0  ;;  %v967_v2 = vpop.f32.mrb[5].mxu1 }
 0x210   : > { %v1311_v3 = vpack.c.bf16 %v1022_v59, %v1021_v57  ;;  %v1331_v4 = vpack.c.bf16 %v1030_v54, %v1029_v58  ;;  %v986_v5 = vadd.f32 %v935_v1, %v745_v12  ;;  %v994_v6 = vadd.f32 %v967_v2, %v753_v44  ;;  %v1442_v7 = vpop.f32.mrb[6].mxu0  ;;  %v1450_v8 = vpop.f32.mrb[6].mxu1 }
 0x211   : > { %1348 = vst [vmem:[%s1744_s0 + $0x8] sm:$0xff] %v1316_v61   ;;  %1352 = vst [vmem:[%s1744_s0 + $0x28] sm:$0xff] %v1336_v62   ;;  %v1011_v9 = vadd.f32 %v1815_v15, %v988_v63  ;;  %v1019_v10 = vadd.f32 %v1815_v15, %v996_v0  ;;  %v989_v13 = vadd.f32 %v1442_v7, %v748_v17  ;;  %v938_v16 = vpop.f32.mrb[7].mxu0  ;;  %v970_v18 = vpop.f32.mrb[7].mxu1 }
 0x212   : > { %v997_v14 = vadd.f32 %v1450_v8, %v756_v47  ;;  %1312 = vst [vmem:[%s1744_s0] sm:$0xff] %v1311_v3   ;;  %1351 = vst [vmem:[%s1744_s0 + $0x20] sm:$0xff] %v1331_v4   ;;  %v1009_v19 = vadd.f32 %v1815_v15, %v986_v5  ;;  %v1017_v20 = vadd.f32 %v1815_v15, %v994_v6 }
 0x213   : > { %v987_v12 = vadd.f32 %v938_v16, %v1810_v11  ;;  %v995_v21 = vadd.f32 %v970_v18, %v754_v43  ;;  %v1012_v22 = vadd.f32 %v1815_v15, %v989_v13  ;;  %v1027_v25 = vmax.f32 %v1011_v9, 0.0 }
 0x214   : > { %v1020_v23 = vadd.f32 %v1815_v15, %v997_v14  ;;  %v1035_v26 = vmax.f32 %v1019_v10, 0.0  ;;  %v1025_v29 = vmax.f32 %v1009_v19, 0.0  ;;  %v1033_v30 = vmax.f32 %v1017_v20, 0.0 }
 0x215   : > { %v1010_v17 = vadd.f32 %v1815_v15, %v987_v12  ;;  %v1018_v24 = vadd.f32 %v1815_v15, %v995_v21  ;;  %v1028_v27 = vmax.f32 %v1012_v22, 0.0 }
 0x216   : > { %v1036_v28 = vmax.f32 %v1020_v23, 0.0 }
 0x217   : > { %v1026_v11 = vmax.f32 %v1010_v17, 0.0  ;;  %v1034_v31 = vmax.f32 %v1018_v24, 0.0  ;;  %v1326_v32 = vpack.c.bf16 %v1028_v27, %v1027_v25 }
 0x218   : > { %v1346_v33 = vpack.c.bf16 %v1036_v28, %v1035_v26 }
 0x219   : > { %v1321_v34 = vpack.c.bf16 %v1026_v11, %v1025_v29  ;;  %v1341_v35 = vpack.c.bf16 %v1034_v31, %v1033_v30  ;;  %1350 = vst [vmem:[%s1744_s0 + $0x18] sm:$0xff] %v1326_v32  }
 0x21a   : > { %1354 = vst [vmem:[%s1744_s0 + $0x38] sm:$0xff] %v1346_v33  }
 0x21b   : > { %1349 = vst [vmem:[%s1744_s0 + $0x10] sm:$0xff] %v1321_v34   ;;  %1353 = vst [vmem:[%s1744_s0 + $0x30] sm:$0xff] %v1341_v35  }
 0x21c PF: > { %s16_s27 = sadd.s32 1, %s1622_s27   ;;  %s1872_s21 = smov %s1602_s22 }
 0x21d   : > { %p13_p0 = scmp.ge.s32.totalorder %s16_s27, 11   ;;  %s1873_s22 = smov %s1712_s10 }
 0x21e   : > { %s1874_s23 = smov %s1614_s25  ;;  %s1875_s24 = smov %s1618_s26 }
 0x21f   : > { %s1876_s25 = smov %s1879_s28  ;;  %s1877_s26 = smov %s1883_s29 }
 0x220   :  { %15 = sbr.rel (!%p13_p0) target bundleno = 6 (0x6), region = 134 }

</bundles_post_ra>
